<compile_context>
chip_gen: v6e
topology: v6e:2x2x1
jax: 0.10.0
libtpu: 0.0.40
codegen_flags: <defaults>
</compile_context>

<pallas_src>
import jax
import jax.numpy as jnp
from jax.experimental import pallas as pl
from jax.experimental.pallas import tpu as pltpu

_F32 = 4


def _vmem_capacity_bytes():
    """Generation-aware VMEM capacity; conservative v7x fallback (64 MiB)."""
    try:
        return int(pltpu.get_tpu_info().vmem_capacity_bytes)
    except Exception:
        return 64 * 1024 * 1024


def _per_row_vmem_bytes(S, H, in_itemsize):
    # Per batch-row VMEM footprint: double-buffered x/h input streams plus the
    # in-kernel f32 temporaries (hoisted upcast xf + two broadcast products)
    # plus the double-buffered f32 output slab.
    x_row = S * H * (2 * in_itemsize + 3 * _F32)
    h_row = H * (2 * in_itemsize + 2 * _F32) + H * 2 * _F32
    return x_row + h_row


def _choose_tb(B, S, H, in_itemsize, vmem_cap):
    """Pick a batch tile: multiple of 8 (or == B), dividing B when possible,
    sized against the VMEM budget, preferring >= 2 grid steps (v7x megacore)."""
    usable = max(4 << 20, int(vmem_cap * 0.6))
    per_row = _per_row_vmem_bytes(S, H, in_itemsize)
    max_rows = min(1024, max(8, usable // max(per_row, 1)))

    cands = [d for d in range(8, min(B, max_rows) + 1, 8) if B % d == 0]
    if not cands:
        if B <= max_rows:
            return B, False                       # one full-batch block (valid BlockSpec)
        return max(8, (max_rows // 8) * 8), True  # last-resort: pad
    split = [d for d in cands if B // d >= 2]
    best = max(cands)
    if split and (max(split) * 4 >= best or max(split) >= 128):
        return max(split), False                  # keep both v7x TCs fed
    return best, False


def attention_kernel(x_ref, h_ref, wa_ref, ba_ref, wcc_ref, wch_ref, bc_ref, o_ref):
    hi = jax.lax.Precision.HIGHEST
    x = x_ref[...]                           # (TB, S, H), input dtype (f32 or bf16)
    h = h_ref[...]                           # (TB, H),    input dtype
    xf = x.astype(jnp.float32)               # single hoisted upcast, reused twice
    hf = h.astype(jnp.float32)

    # Folded GENERAL score: scores = x . (h @ Wa) + (h . ba)
    u = jnp.dot(h, wa_ref[...], preferred_element_type=jnp.float32, precision=hi)  # (TB, H)
    b0 = jnp.sum(hf * ba_ref[...], axis=1, keepdims=True)                          # (TB, 1)
    # NOTE: reduces over the lane (H) axis via the XLU; fine while HBM-bound.
    scores = jnp.sum(xf * u[:, None, :], axis=2) + b0                              # (TB, S)

    # Softmax over the sequence dim (exact divide; approx reciprocal cost accuracy).
    m = jnp.max(scores, axis=1, keepdims=True)
    e = jnp.exp(scores - m)
    p = e / jnp.sum(e, axis=1, keepdims=True)                                      # (TB, S)

    # context = sum_s p[s] * x[s]
    ctx = jnp.sum(xf * p[:, :, None], axis=1)                                      # (TB, H)

    # concat_linear split: tanh(ctx @ Wc_ctx^T + h @ Wc_h^T + bc)
    pre = (jnp.dot(ctx, wcc_ref[...], preferred_element_type=jnp.float32, precision=hi)
           + jnp.dot(h, wch_ref[...], preferred_element_type=jnp.float32, precision=hi)
           + bc_ref[...])
    o_ref[...] = jnp.tanh(pre).astype(o_ref.dtype)


def attention_general(rnn_outputs, final_hidden, wa, ba, wc, bc, *, input_dtype=None):
    """Pallas GENERAL attention.

    rnn_outputs: (B, S, H), final_hidden: (B, H).
    wa: (H, H), ba: (H,), wc: (H, 2H), bc: (H,)  -- nn.Linear weight layouts.
    input_dtype: pass jnp.bfloat16 on v6e/v7x production shapes to halve the
                 dominant HBM stream; accumulation stays f32 in-kernel.
    """
    B, S, H = rnn_outputs.shape

    # Wrapper-side weight prep (tiny): split concat_linear into ctx / hidden halves.
    wcc_t = wc[:, :H].T                              # (H, H)
    wch_t = wc[:, H:].T                              # (H, H)
    ba2 = ba.reshape(1, H).astype(jnp.float32)
    bc2 = bc.reshape(1, H).astype(jnp.float32)
    wa_k = wa
    if input_dtype is not None:
        rnn_outputs = rnn_outputs.astype(input_dtype)
        final_hidden = final_hidden.astype(input_dtype)
        wa_k = wa_k.astype(input_dtype)
        wcc_t = wcc_t.astype(input_dtype)
        wch_t = wch_t.astype(input_dtype)

    isz = jnp.dtype(rnn_outputs.dtype).itemsize
    w_isz = jnp.dtype(wa_k.dtype).itemsize

    vmem_cap = _vmem_capacity_bytes()
    tb, need_pad = _choose_tb(B, S, H, isz, vmem_cap)

    if need_pad:
        # Last-resort only (B has no multiple-of-8 divisor and exceeds the tile
        # budget); the common path avoids this extra HBM read+write of x.
        Bp = ((B + tb - 1) // tb) * tb
        rnn_outputs = jnp.pad(rnn_outputs, ((0, Bp - B), (0, 0), (0, 0)))
        final_hidden = jnp.pad(final_hidden, ((0, Bp - B), (0, 0)))
    else:
        Bp = B
    grid_b = Bp // tb

    # VMEM limit from the chosen tile (streams + f32 temporaries + resident
    # weights), capped below the detected physical capacity.
    need = tb * _per_row_vmem_bytes(S, H, isz) + 2 * (3 * H * H * w_isz + 2 * H * _F32)
    vmem_limit = int(min(vmem_cap * 9 // 10, max(32 << 20, 2 * need)))
    vmem_limit = int(min(max(vmem_limit, need + (1 << 20)), vmem_cap))

    # NOTE: demo H=32 < 128 leaves lanes partially masked on the (tb,H) stores;
    # the (B,H) output is tiny next to the x stream so it is not binding here.
    # For production H keep it a multiple of 128 (or fuse the consumer).
    # TODO(synk): for large H, single-buffer the resident weight blocks
    # (pipeline_mode=pl.Buffered(1)) to reclaim ~3*H*H*dtype bytes of VMEM.
    out = pl.pallas_call(
        attention_kernel,
        out_shape=jax.ShapeDtypeStruct((Bp, H), jnp.float32),
        grid_spec=pltpu.PrefetchScalarGridSpec(
            num_scalar_prefetch=0,
            grid=(grid_b,),
            in_specs=[
                pl.BlockSpec((tb, S, H), lambda b: (b, 0, 0)),   # rnn_outputs tile (streamed)
                pl.BlockSpec((tb, H), lambda b: (b, 0)),         # final hidden tile
                pl.BlockSpec((H, H), lambda b: (0, 0)),          # attn weight (resident)
                pl.BlockSpec((1, H), lambda b: (0, 0)),          # attn bias
                pl.BlockSpec((H, H), lambda b: (0, 0)),          # concat_linear ctx half
                pl.BlockSpec((H, H), lambda b: (0, 0)),          # concat_linear hidden half
                pl.BlockSpec((1, H), lambda b: (0, 0)),          # concat_linear bias
            ],
            out_specs=pl.BlockSpec((tb, H), lambda b: (b, 0)),   # lane-dense (tb, H) slab
        ),
        compiler_params=pltpu.CompilerParams(
            dimension_semantics=("parallel",),
            vmem_limit_bytes=vmem_limit,
        ),
    )(rnn_outputs, final_hidden, wa_k, ba2, wcc_t, wch_t, bc2)

    return out[:B]


def attention_general_ref(x, h, wa, ba, wc, bc):
    hi = jax.lax.Precision.HIGHEST
    aw = jnp.einsum("bsj,kj->bsk", x, wa, precision=hi) + ba     # attn(rnn_outputs)
    scores = jnp.einsum("bsk,bk->bs", aw, h, precision=hi)       # (B, S)
    p = jax.nn.softmax(scores, axis=1)                           # (B, S)
    ctx = jnp.einsum("bsh,bs->bh", x, p, precision=hi)           # (B, H)
    cat = jnp.concatenate([ctx, h], axis=1)                      # (B, 2H)
    return jnp.tanh(jnp.einsum("bi,oi->bo", cat, wc, precision=hi) + bc)


if __name__ == "__main__":
    B, S, H = 16, 8, 32   # -> tb = 8, grid = 2 batch blocks (both v7x TCs get work)

    key = jax.random.PRNGKey(0)
    k_x, k_h, k_wa, k_ba, k_wc, k_bc = jax.random.split(key, 6)

    rnn_outputs = jax.random.normal(k_x, (B, S, H), dtype=jnp.float32)
    final_hidden = jax.random.normal(k_h, (B, H), dtype=jnp.float32)

    # Deterministic parameter init (PyTorch nn.Linear-style uniform bounds).
    bound_a = 1.0 / (H ** 0.5)
    wa = jax.random.uniform(k_wa, (H, H), jnp.float32, -bound_a, bound_a)      # attn.weight
    ba = jax.random.uniform(k_ba, (H,), jnp.float32, -bound_a, bound_a)        # attn.bias
    bound_c = 1.0 / ((2 * H) ** 0.5)
    wc = jax.random.uniform(k_wc, (H, 2 * H), jnp.float32, -bound_c, bound_c)  # concat_linear.weight
    bc = jax.random.uniform(k_bc, (H,), jnp.float32, -bound_c, bound_c)        # concat_linear.bias

    out = attention_general(rnn_outputs, final_hidden, wa, ba, wc, bc)
    out = jax.block_until_ready(out)

    ref = attention_general_ref(rnn_outputs, final_hidden, wa, ba, wc, bc)
    assert out.shape == (B, H)
    # With the exact softmax divide and HIGHEST-precision dots on both sides
    # the observed difference is ~1e-6; 2e-3 is a safety margin, not a fudge.
    assert jnp.allclose(out, ref, atol=2e-3, rtol=2e-3), "mismatch vs reference"

    # TODO(synk): production shapes on v6e/v7x should pass input_dtype=jnp.bfloat16
    # (f32 accumulation preserved in-kernel); kept f32 here for a tight check.

    print("KERNEL_OK")
</pallas_src>

<mosaic_0001>
module attributes {stable_mosaic.version = 11 : i64} {
  func.func @attention_kernel(%arg0: i32, %arg1: memref<8x8x32xf32, #tpu.memory_space<vmem>>, %arg2: memref<8x32xf32, #tpu.memory_space<vmem>>, %arg3: memref<32x32xf32, #tpu.memory_space<vmem>>, %arg4: memref<1x32xf32, #tpu.memory_space<vmem>>, %arg5: memref<32x32xf32, #tpu.memory_space<vmem>>, %arg6: memref<32x32xf32, #tpu.memory_space<vmem>>, %arg7: memref<1x32xf32, #tpu.memory_space<vmem>>, %arg8: memref<8x32xf32, #tpu.memory_space<vmem>>) attributes {dimension_semantics = [#tpu.dimension_semantics<parallel>], iteration_bounds = array<i64: 2>, scalar_prefetch = 0 : i64, scratch_operands = 0 : i64, tpu.core_type = #tpu.core_type<tc>, window_params = [{transform_indices = @transform_0, window_bounds = array<i64: 8, 8, 32>}, {transform_indices = @transform_1, window_bounds = array<i64: 8, 32>}, {pipeline_mode = #tpu.pipeline_mode<synchronous>, transform_indices = @transform_2, window_bounds = array<i64: 32, 32>}, {pipeline_mode = #tpu.pipeline_mode<synchronous>, transform_indices = @transform_3, window_bounds = array<i64: 1, 32>}, {pipeline_mode = #tpu.pipeline_mode<synchronous>, transform_indices = @transform_4, window_bounds = array<i64: 32, 32>}, {pipeline_mode = #tpu.pipeline_mode<synchronous>, transform_indices = @transform_5, window_bounds = array<i64: 32, 32>}, {pipeline_mode = #tpu.pipeline_mode<synchronous>, transform_indices = @transform_6, window_bounds = array<i64: 1, 32>}, {transform_indices = @transform_7, window_bounds = array<i64: 8, 32>}]} {
    %c0 = arith.constant 0 : index
    %c0_0 = arith.constant 0 : index
    %c0_1 = arith.constant 0 : index
    %0 = vector.load %arg1[%c0, %c0_0, %c0_1] : memref<8x8x32xf32, #tpu.memory_space<vmem>>, vector<8x8x32xf32>
    %c0_2 = arith.constant 0 : index
    %c0_3 = arith.constant 0 : index
    %1 = vector.load %arg2[%c0_2, %c0_3] : memref<8x32xf32, #tpu.memory_space<vmem>>, vector<8x32xf32>
    %c0_4 = arith.constant 0 : index
    %c0_5 = arith.constant 0 : index
    %2 = vector.load %arg3[%c0_4, %c0_5] : memref<32x32xf32, #tpu.memory_space<vmem>>, vector<32x32xf32>
    %cst = arith.constant dense<0.000000e+00> : vector<8x32xf32>
    %3 = tpu.matmul %1, %2, %cst {dimension_numbers = #tpu.dot_dimension_numbers<[1], [0], [0], [1], [0, 0, 1, 1], [], []>, precision = #tpu.contract_precision<fp32>} : vector<8x32xf32>, vector<32x32xf32>, vector<8x32xf32> -> vector<8x32xf32>
    %c0_6 = arith.constant 0 : index
    %c0_7 = arith.constant 0 : index
    %4 = vector.load %arg4[%c0_6, %c0_7] : memref<1x32xf32, #tpu.memory_space<vmem>>, vector<1x32xf32>
    %5 = vector.broadcast %4 : vector<1x32xf32> to vector<8x32xf32>
    %6 = arith.mulf %1, %5 : vector<8x32xf32>
    %cst_8 = arith.constant dense<0.000000e+00> : vector<8xf32>
    %7 = vector.multi_reduction <add>, %6, %cst_8 [1] : vector<8x32xf32> to vector<8xf32>
    %8 = vector.shape_cast %7 : vector<8xf32> to vector<8x1xf32>
    %9 = vector.shape_cast %3 : vector<8x32xf32> to vector<8x1x32xf32>
    %10 = vector.broadcast %9 : vector<8x1x32xf32> to vector<8x8x32xf32>
    %11 = arith.mulf %0, %10 : vector<8x8x32xf32>
    %cst_9 = arith.constant dense<0.000000e+00> : vector<8x8xf32>
    %12 = vector.multi_reduction <add>, %11, %cst_9 [2] : vector<8x8x32xf32> to vector<8x8xf32>
    %13 = vector.broadcast %8 : vector<8x1xf32> to vector<8x8xf32>
    %14 = arith.addf %12, %13 : vector<8x8xf32>
    %cst_10 = arith.constant dense<0xFF800000> : vector<8xf32>
    %15 = vector.multi_reduction <maximumf>, %14, %cst_10 [1] : vector<8x8xf32> to vector<8xf32>
    %16 = vector.shape_cast %15 : vector<8xf32> to vector<8x1xf32>
    %17 = vector.broadcast %16 : vector<8x1xf32> to vector<8x8xf32>
    %18 = arith.subf %14, %17 : vector<8x8xf32>
    %19 = math.exp %18 : vector<8x8xf32>
    %cst_11 = arith.constant dense<0.000000e+00> : vector<8xf32>
    %20 = vector.multi_reduction <add>, %19, %cst_11 [1] : vector<8x8xf32> to vector<8xf32>
    %21 = vector.shape_cast %20 : vector<8xf32> to vector<8x1xf32>
    %22 = vector.broadcast %21 : vector<8x1xf32> to vector<8x8xf32>
    %23 = arith.divf %19, %22 : vector<8x8xf32>
    %24 = vector.shape_cast %23 : vector<8x8xf32> to vector<8x8x1xf32>
    %25 = vector.broadcast %24 : vector<8x8x1xf32> to vector<8x8x32xf32>
    %26 = arith.mulf %0, %25 : vector<8x8x32xf32>
    %cst_12 = arith.constant dense<0.000000e+00> : vector<8x32xf32>
    %27 = vector.multi_reduction <add>, %26, %cst_12 [1] : vector<8x8x32xf32> to vector<8x32xf32>
    %c0_13 = arith.constant 0 : index
    %c0_14 = arith.constant 0 : index
    %28 = vector.load %arg5[%c0_13, %c0_14] : memref<32x32xf32, #tpu.memory_space<vmem>>, vector<32x32xf32>
    %cst_15 = arith.constant dense<0.000000e+00> : vector<8x32xf32>
    %29 = tpu.matmul %27, %28, %cst_15 {dimension_numbers = #tpu.dot_dimension_numbers<[1], [0], [0], [1], [0, 0, 1, 1], [], []>, precision = #tpu.contract_precision<fp32>} : vector<8x32xf32>, vector<32x32xf32>, vector<8x32xf32> -> vector<8x32xf32>
    %c0_16 = arith.constant 0 : index
    %c0_17 = arith.constant 0 : index
    %30 = vector.load %arg6[%c0_16, %c0_17] : memref<32x32xf32, #tpu.memory_space<vmem>>, vector<32x32xf32>
    %cst_18 = arith.constant dense<0.000000e+00> : vector<8x32xf32>
    %31 = tpu.matmul %1, %30, %cst_18 {dimension_numbers = #tpu.dot_dimension_numbers<[1], [0], [0], [1], [0, 0, 1, 1], [], []>, precision = #tpu.contract_precision<fp32>} : vector<8x32xf32>, vector<32x32xf32>, vector<8x32xf32> -> vector<8x32xf32>
    %32 = arith.addf %29, %31 : vector<8x32xf32>
    %c0_19 = arith.constant 0 : index
    %c0_20 = arith.constant 0 : index
    %33 = vector.load %arg7[%c0_19, %c0_20] : memref<1x32xf32, #tpu.memory_space<vmem>>, vector<1x32xf32>
    %34 = vector.broadcast %33 : vector<1x32xf32> to vector<8x32xf32>
    %35 = arith.addf %32, %34 : vector<8x32xf32>
    %36 = math.tanh %35 : vector<8x32xf32>
    %c0_21 = arith.constant 0 : index
    %c0_22 = arith.constant 0 : index
    %37 = vector.load %arg8[%c0_21, %c0_22] : memref<8x32xf32, #tpu.memory_space<vmem>>, vector<8x32xf32>
    tpu.vector_store %arg8[%c0_21, %c0_22], %36 {strides = array<i32>} : memref<8x32xf32, #tpu.memory_space<vmem>>, vector<8x32xf32>,
    return
  }
  func.func @transform_0(%arg0: i32) -> (i32, i32, i32) {
    %c0_i32 = arith.constant 0 : i32
    %c0_i32_0 = arith.constant 0 : i32
    %c0_i32_1 = arith.constant 0 : i32
    return %arg0, %c0_i32, %c0_i32_0 : i32, i32, i32
  }
  func.func @transform_1(%arg0: i32) -> (i32, i32) {
    %c0_i32 = arith.constant 0 : i32
    %c0_i32_0 = arith.constant 0 : i32
    return %arg0, %c0_i32 : i32, i32
  }
  func.func @transform_2(%arg0: i32) -> (i32, i32) {
    %c0_i32 = arith.constant 0 : i32
    %c0_i32_0 = arith.constant 0 : i32
    %c0_i32_1 = arith.constant 0 : i32
    return %c0_i32, %c0_i32_0 : i32, i32
  }
  func.func @transform_3(%arg0: i32) -> (i32, i32) {
    %c0_i32 = arith.constant 0 : i32
    %c0_i32_0 = arith.constant 0 : i32
    %c0_i32_1 = arith.constant 0 : i32
    return %c0_i32, %c0_i32_0 : i32, i32
  }
  func.func @transform_4(%arg0: i32) -> (i32, i32) {
    %c0_i32 = arith.constant 0 : i32
    %c0_i32_0 = arith.constant 0 : i32
    %c0_i32_1 = arith.constant 0 : i32
    return %c0_i32, %c0_i32_0 : i32, i32
  }
  func.func @transform_5(%arg0: i32) -> (i32, i32) {
    %c0_i32 = arith.constant 0 : i32
    %c0_i32_0 = arith.constant 0 : i32
    %c0_i32_1 = arith.constant 0 : i32
    return %c0_i32, %c0_i32_0 : i32, i32
  }
  func.func @transform_6(%arg0: i32) -> (i32, i32) {
    %c0_i32 = arith.constant 0 : i32
    %c0_i32_0 = arith.constant 0 : i32
    %c0_i32_1 = arith.constant 0 : i32
    return %c0_i32, %c0_i32_0 : i32, i32
  }
  func.func @transform_7(%arg0: i32) -> (i32, i32) {
    %c0_i32 = arith.constant 0 : i32
    %c0_i32_0 = arith.constant 0 : i32
    return %arg0, %c0_i32 : i32, i32
  }
}

</mosaic_0001>

<bundles_post_ra>
// kernel: tpu_custom_call.1
= control target key start
LH: loop header
LB: loop body
LE: loop exit
PB: predicated region body
PF: predicated region fallthrough
CT: control target
= control target key end

     0   :  { %s4047_s0 = inlined_call_operand.hbm [shape: f32[16,8,32], index: 0, kind: input, shape index: {}]   ;;  %s4048_s1 = inlined_call_operand.hbm [shape: f32[16,32], index: 1, kind: input, shape index: {}]   ;;  %s4049_s2 = inlined_call_operand.hbm [shape: f32[32,32], index: 2, kind: input, shape index: {}]   ;;  %s4050_s3 = inlined_call_operand.vmem [shape: f32[1,32], index: 3, kind: input, shape index: {}]   ;;  %s4051_s4 = inlined_call_operand.hbm [shape: f32[32,32], index: 4, kind: input, shape index: {}]   ;;  %s4052_s5 = inlined_call_operand.hbm [shape: f32[32,32], index: 5, kind: input, shape index: {}]   ;;  %s4053_s6 = inlined_call_operand.vmem [shape: f32[1,32], index: 6, kind: input, shape index: {}]   ;;  %s4054_s7 = inlined_call_operand.hbm [shape: f32[16,32], index: 7, kind: output, shape index: {}]  }
   0x1   :  { %4061 = sst [smem:[#allocation18_spill]] %s4047_s0 }
   0x2   :  { %4062 = sst [smem:[#allocation19_spill]] %s4049_s2 }
   0x3   :  { %4063 = sst [smem:[#allocation20_spill]] %s4051_s4 }
   0x4   :  { %4064 = sst [smem:[#allocation21_spill]] %s4052_s5 }
   0x5   :  { %12 = vsyncpa [#allocation3], 0 }
   0x6   :  { %14 = vsyncpa [#allocation3 + $0x1], 0 }
   0x7   :  { %15 = vsyncpa [#allocation6], 0 }
   0x8   :  { %17 = vsyncpa [#allocation6 + $0x1], 0 }
   0x9   :  { %18 = vsyncpa [#allocation9], 0 }
   0xa   :  { %19 = vsyncpa [#allocation4], 0 }
   0xb   :  { %21 = vsyncpa [#allocation4 + $0x1], 0  ;;  %s3289_s24 = smov 0   ;;  %s3291_s25 = smov 0  }
   0xc   :  { %s3293_s26 = smov 0   ;;  %s3295_s27 = smov 0  }
   0xd LB: > { %s3310_s28 = sadd.s32 4294967295, %s3235_s27   ;;  %s2588_s29 = sadd.s32 4294967294, %s3235_s27   ;;  %s3235_s27 = sphi %s3295_s27, %s4093_s27   ;;  %s3231_s26 = sphi %s3293_s26, %s4092_s26   ;;  %s3227_s25 = sphi %s3291_s25, %s4091_s25   ;;  %s3223_s24 = sphi %s3289_s24, %s4090_s24  }
   0xe   : > { %p47_p0 = scmp.ne.s32.totalorder %s3227_s25, %s3223_s24  ;;  %p4055_p1 = scmp.eq.s32.totalorder %s3310_s28, 0 }
   0xf   : > { %p202_p2 = scmp.eq.s32.totalorder %s3310_s28, 1  ;;  %p208_p3 = scmp.eq.s32.totalorder %s2588_s29, 1 }
  0x10   : > { %p3319_p4 = por %p4055_p1, %p47_p0  ;;  %p2589_p5 = scmp.ge.s32.totalorder %s3235_s27, 1 }
  0x11   : > { %p3324_p6 = por %p208_p3, %p47_p0  ;;  %p215_p7 = scmp.lt.s32.totalorder %s3235_s27, 3 }
  0x12   : > { %s4065_s30 = scalar_select %p3319_p4, 1, 0 }
  0x13   : > { %s4066_s8 = scalar_select %p3324_p6, 1, 0 }
  0x14   : > { %p3329_p8 = pnand %p2589_p5, %p215_p7  ;;  %s3237_s10 = smov [#allocation7]  }
  0x15   : > { %s227_s11 = sshll.u32 %s3237_s10, 4  ;;  %s3238_s13 = smov [#allocation8]   ;;  %s228_s11 = int_to_ptr.vmem [resolvable:$true] %s227_s11 }
  0x16   : > { %s4067_s9 = scalar_select %p3329_p8, 1, 0 }
  0x17   : > { %p2919_p9 = pneg %p3329_p8  ;;  %s243_s14 = sshll.u32 %s3238_s13, 4  ;;  %s244_s14 = int_to_ptr.vmem [resolvable:$true] %s243_s14 }
  0x18   : > { %s3239_s15 = smov [#allocation10]   ;;  %s3036_s17 = scalar_lea.vmem %s228_s11, 512 }
  0x19   : > { %p3338_p11 = pnand %p2919_p9, %p4055_p1  ;;  %s256_s16 = sshll.u32 %s3239_s15, 4  ;;  %s257_s16 = int_to_ptr.vmem [resolvable:$true] %s256_s16 }
  0x1a   : > { %p3037_p13 = scmp.ne.s32.totalorder %s228_s11, %s3036_s17  ;;  %p3044_p5 = scmp.lt.s32.totalorder %s228_s11, %s228_s11 }
  0x1b   : > { %p3027_p12 = pneg %p3338_p11  ;;  %p3045_p7 = scmp.lt.s32.totalorder %s3036_s17, %s3036_s17 }
  0x1d   : > { %p3039_p0 = pnand %p3037_p13, %p3027_p12  ;;  %p3046_p9 = por %p3045_p7, %p3044_p5 }
  0x1f   : > { %p3040_p3 = pneg %p3039_p0 }
  0x21   : > { %p3047_p10 = pnand %p3046_p9, %p3040_p3 }
  0x23   : > { %3050 = shalt.err (!%p3047_p10)
}
  0x24   : > { %s4056_s18 = smov 128   ;;  %s4057_s19 = smov 8  }
  0x25   : > { %s4069_s2 = sld [smem:[#allocation19_spill]]  ;;  %s3062_s22 = scalar_lea.vmem %s244_s14, 512 }
  0x26   : > { %p3063_p13 = scmp.ne.s32.totalorder %s244_s14, %s3062_s22  ;;  %p3070_p3 = scmp.lt.s32.totalorder %s244_s14, %s244_s14 }
  0x27   : > { %p3071_p10 = scmp.lt.s32.totalorder %s3062_s22, %s3062_s22 }
  0x28   : > { %p3065_p0 = pnand %p3063_p13, %p3027_p12 }
  0x29   : > { %p3072_p7 = por %p3071_p10, %p3070_p3 }
  0x2a   : > { %p3066_p5 = pneg %p3065_p0 }
  0x2b   : > { %2922 = dma.hbm_to_vmem [thread:$0]  (!%p3338_p11), %s4069_s2, 512, %s228_s11, [#allocation6], %s4056_s18, %s4056_s18, %s4057_s19  }
  0x2c   : > { %p3073_p9 = pnand %p3072_p7, %p3066_p5 }
  0x2e   : > { %3076 = shalt.err (!%p3073_p9)
}
  0x2f   : > { %s4070_s4 = sld [smem:[#allocation20_spill]]  ;;  %s3088_s10 = scalar_lea.vmem %s257_s16, 512 }
  0x30   : > { %p3089_p1 = scmp.ne.s32.totalorder %s257_s16, %s3088_s10  ;;  %p3096_p3 = scmp.lt.s32.totalorder %s257_s16, %s257_s16 }
  0x31   : > { %p3097_p5 = scmp.lt.s32.totalorder %s3088_s10, %s3088_s10 }
  0x32   : > { %p3091_p13 = pnand %p3089_p1, %p3027_p12 }
  0x33   : > { %p3098_p10 = por %p3097_p5, %p3096_p3 }
  0x34   : > { %p3092_p0 = pneg %p3091_p13 }
  0x35   : > { %2925 = dma.hbm_to_vmem [thread:$0]  (!%p3338_p11), %s4070_s4, 512, %s244_s14, [#allocation9], %s4056_s18, %s4056_s18, %s4057_s19  }
  0x36   : > { %p3099_p7 = pnand %p3098_p10, %p3092_p0 }
  0x38   : > { %3102 = shalt.err (!%p3099_p7)
}
  0x39   : > { %s4071_s5 = sld [smem:[#allocation21_spill]]  ;;  %s3378_s14 = sadd.s32 1, %s3235_s27  }
  0x3a   : > { %s31_s12 = ssub.s32 %s3235_s27, %s3378_s14  ;;  %s34_s15 = sadd.s32 1, %s3231_s26 }
  0x3b   : > { %p32_p1 = scmp.eq.s32.totalorder %s31_s12, 0  ;;  %p41_p12 = scmp.ne.s32.totalorder %s3231_s26, %s3227_s25 }
  0x3c   : > { %p42_p9 = scmp.eq.s32.totalorder %s3235_s27, 0  ;;  %p2943_p13 = scmp.lt.s32.totalorder %s3235_s27, 2 }
  0x3d   : > { %s3388_s17 = scalar_select %p32_p1, %s3231_s26, %s34_s15  }
  0x3e   : > { %p43_p0 = por %p42_p9, %p41_p12  ;;  %p3392_p3 = por %p202_p2, %p41_p12 }
  0x3f   : > { %2928 = dma.hbm_to_vmem [thread:$0]  (!%p3338_p11), %s4071_s5, 512, %s257_s16, [#allocation9], %s4056_s18, %s4056_s18, %s4057_s19  }
  0x40   : > { %4072 = sst [smem:[#allocation17_spill]] %s3388_s17  ;;  %s3397_s21 = sand.u32 1, %s3231_s26  }
  0x41   : > { %s4073_s20 = scalar_select %p3392_p3, 1, 0 }
  0x42   : > { %s2612_s16 = sshll.u32 %s3235_s27, 10  ;;  %s2594_s22 = sshll.u32 %s3397_s21, 6 }
  0x43   : > { %s4074_s0 = sld [smem:[#allocation18_spill]]  ;;  %s277_s11 = scalar_lea.vmem [#allocation2], %s2594_s22 }
  0x44   : > { %s284_s13 = sshll.u32 %s277_s11, 4  ;;  %p3406_p2 = pnand %p2943_p13, %p43_p0  ;;  %s3410_s13 = int_to_ptr.vmem [resolvable:$true] %s284_s13 }
  0x46   : > { %p3105_p5 = pneg %p3406_p2 }
  0x49   : > { %s3404_s10 = scalar_lea.hbm %s4074_s0, %s2612_s16  ;;  %s3108_s23 = scalar_lea.hbm %s4074_s0, 2048 }
  0x4a   : > { %s3103_s19 = scalar_lea.hbm %s3404_s10, 1024  ;;  %p3109_p1 = scmp.lt.s32.totalorder %s3404_s10, %s4074_s0 }
  0x4b   : > { %p3104_p11 = scmp.ne.s32.totalorder %s3404_s10, %s3103_s19  ;;  %p3110_p12 = scmp.lt.s32.totalorder %s3108_s23, %s3103_s19 }
  0x4d   : > { %p3106_p10 = pnand %p3105_p5, %p3104_p11  ;;  %p3111_p9 = por %p3110_p12, %p3109_p1 }
  0x4f   : > { %p3107_p7 = pneg %p3106_p10 }
  0x51   : > { %p3112_p13 = pnand %p3111_p9, %p3107_p7 }
  0x53   : > { %3115 = shalt.err (!%p3112_p13)
}
  0x54   : > { %s3116_s15 = scalar_lea.vmem %s3410_s13, 1024  ;;  %s3242_s16 = smov [#allocation2]  }
  0x55   : > { %p3117_p0 = scmp.ne.s32.totalorder %s3410_s13, %s3116_s15  ;;  %s3121_s22 = sshll.u32 %s3242_s16, 4  ;;  %s3122_s22 = int_to_ptr.vmem [resolvable:$false] %s3121_s22 }
  0x56   : > { %s3123_s18 = scalar_lea.vmem %s3122_s22, 2048  ;;  %p3124_p6 = scmp.lt.s32.totalorder %s3410_s13, %s3122_s22 }
  0x57   : > { %p3119_p11 = pnand %p3117_p0, %p3105_p5  ;;  %p3125_p3 = scmp.lt.s32.totalorder %s3123_s18, %s3116_s15 }
  0x59   : > { %p3120_p10 = pneg %p3119_p11  ;;  %p3126_p4 = por %p3125_p3, %p3124_p6 }
  0x5b   : > { %p3127_p1 = pnand %p3126_p4, %p3120_p10 }
  0x5d   : > { %3130 = shalt.err (!%p3127_p1)
}
  0x5e   : > { %s4076_s19 = smov 8   ;;  %s4077_s23 = smov 128  }
  0x5f   : > { %s4078_s29 = scalar_lea.sflag [#allocation3], %s3397_s21  ;;  %s2597_s11 = sshll.u32 %s3397_s21, 3 }
  0x60   : > { %2932 = dma.hbm_to_vmem [thread:$0]  (!%p3406_p2), %s3404_s10, 1024, %s3410_s13, %s4078_s29, %s4077_s23, %s4077_s23, %s4076_s19  }
  0x61   : > { %s2598_s16 = sshll.u32 %s3235_s27, 7  ;;  %s298_s0 = scalar_lea.vmem [#allocation5], %s2597_s11 }
  0x62   : > { %s3448_s22 = scalar_lea.hbm %s4048_s1, %s2598_s16  ;;  %s305_s2 = sshll.u32 %s298_s0, 4  ;;  %s306_s2 = int_to_ptr.vmem [resolvable:$true] %s305_s2 }
  0x63   : > { %s4079_s4 = sand.u32 1, %s3235_s27   ;;  %s3131_s17 = scalar_lea.hbm %s3448_s22, 128 }
  0x64   : > { %s295_s5 = scalar_lea.sflag [#allocation6], %s4079_s4  ;;  %p3132_p4 = scmp.ne.s32.totalorder %s3448_s22, %s3131_s17 }
  0x65   : > { %s3136_s13 = scalar_lea.hbm %s4048_s1, 256  ;;  %p3137_p7 = scmp.lt.s32.totalorder %s3448_s22, %s4048_s1 }
  0x66   : > { %p3134_p6 = pnand %p3132_p4, %p3105_p5  ;;  %p3138_p12 = scmp.lt.s32.totalorder %s3136_s13, %s3131_s17 }
  0x68   : > { %p3135_p3 = pneg %p3134_p6  ;;  %p3139_p9 = por %p3138_p12, %p3137_p7 }
  0x6a   : > { %p3140_p13 = pnand %p3139_p9, %p3135_p3 }
  0x6c   : > { %3143 = shalt.err (!%p3140_p13)
}
  0x6d   : > { %s3144_s0 = scalar_lea.vmem %s306_s2, 128  ;;  %s3243_s4 = smov [#allocation5]  }
  0x6e   : > { %p3145_p0 = scmp.ne.s32.totalorder %s306_s2, %s3144_s0  ;;  %s3149_s29 = sshll.u32 %s3243_s4, 4  ;;  %s3150_s29 = int_to_ptr.vmem [resolvable:$false] %s3149_s29 }
  0x6f   : > { %s3151_s11 = scalar_lea.vmem %s3150_s29, 256  ;;  %p3152_p1 = scmp.lt.s32.totalorder %s306_s2, %s3150_s29 }
  0x70   : > { %p3147_p11 = pnand %p3145_p0, %p3105_p5  ;;  %p3153_p4 = scmp.lt.s32.totalorder %s3151_s11, %s3144_s0 }
  0x72   : > { %p3148_p10 = pneg %p3147_p11  ;;  %p3154_p6 = por %p3153_p4, %p3152_p1 }
  0x74   : > { %p3155_p8 = pnand %p3154_p6, %p3148_p10 }
  0x76   : > { %3158 = shalt.err (!%p3155_p8)
}
  0x77   : > { %2935 = dma.hbm_to_vmem [thread:$0]  (!%p3406_p2), %s3448_s22, 128, %s306_s2, %s295_s5  }
  0x78   : > { %p4080_p3 = scmp.ne.s32.totalorder %s4067_s9, 0 }
  0x79   : > { %s3473_s17 = sand.u32 (!%p4080_p3), 1, %s3227_s25   ;;  %p4081_p5 = scmp.ne.s32.totalorder (!%p4080_p3), %s4065_s30, 0 }
  0x7a   : > { %314 = sbr.rel (%p4080_p3) target bundleno = 1560 (0x618), region = 48  ;;  %s2600_s16 = sshll.u32 (!%p4080_p3), %s3473_s17, 6 }
  0x7b   : > { %s317_s18 = scalar_lea.sflag (!%p4080_p3), [#allocation3], %s3473_s17  ;;  %s3477_s15 = scalar_lea.vmem (!%p4080_p3), [#allocation2], %s2600_s16 }
  0x7f   : > { %3202 = dma.done.wait (%p4081_p5), %s317_s18, 1024  }
  0x80   : > { %3204 = vsyncadd (%p4081_p5), %s317_s18, 4294966272  ;;  %s325_s2 = sand.u32 1, %s3310_s28   ;;  %s2601_s5 = sshll.u32 %s3473_s17, 3 }
  0x81   : > { %s326_s9 = scalar_lea.sflag [#allocation6], %s325_s2  ;;  %s329_s12 = scalar_lea.vmem [#allocation5], %s2601_s5 }
  0x82   : > { %3206 = dma.done.wait (%p4081_p5), %s326_s9, 128  }
  0x83   : > { %3208 = vsyncadd (%p4081_p5), %s326_s9, 4294967168  ;;  %p4082_p8 = scmp.eq.s32.totalorder %s3310_s28, 0 }
  0x85   : > { %3210 = dma.done.wait (%p4082_p8), [#allocation6], 512   ;;  %p4083_p2 = pmov %p4082_p8 }
  0x87   : > { %3212 = vsyncadd (%p4083_p2), [#allocation6], 4294966784  ;;  %p4084_p7 = pmov %p4083_p2 }
  0x88   : > { %p4085_p12 = pmov %p4083_p2 }
  0x89   : > { %3214 = dma.done.wait (%p4084_p7), [#allocation9], 1024  }
  0x8a   : > { %3216 = vsyncadd (%p4085_p12), [#allocation9], 4294966272  ;;  %v3244_v0 = vmov 0.0   ;;  %vm3245_vm0 = vmmov 0   ;;  %vm391_vm1 = vcmask 261120   ;;  %v390_v1 = vld [vmem:[#allocation7 + $0x18] sm:$0xff]  ;;  %v896_v45 = vlaneseq }
  0x8b   : > { %2703 = vmatprep.subr.mxu0 %v3244_v0  ;;  %2714 = vmatprep.subr.mxu1 %v3244_v0  ;;  %v389_v2 = vld [vmem:[#allocation7 + $0x10] sm:$0xff]  ;;  %v388_v3 = vld [vmem:[#allocation7 + $0x8] sm:$0xff]  ;;  %v3505_v4 = vand.u32 4294901760, %v390_v1  ;;  %v387_v7 = vld [vmem:[#allocation7] sm:$0xff]  ;;  %v3246_v43 = vmov 1966171168  }
  0x8c   : > { %2711 = vmatprep.mubr.msk.f32.mxu0 %vm3245_vm0, %v3244_v0  ;;  %2722 = vmatprep.mubr.msk.f32.mxu1 %vm3245_vm0, %v3244_v0  ;;  %v3507_v5 = vand.u32 4294901760, %v389_v2  ;;  %v3509_v6 = vand.u32 4294901760, %v388_v3  ;;  %v3511_v8 = vld [vmem:[%s329_s12] sm:$0xff]  ;;  %v3513_v9 = vand.u32 4294901760, %v387_v7  ;;  %v894_v44 = vunpack.c.l.s4 %v3246_v43  ;;  %s2609_s13 = sshll.u32 %s3310_s28, 7  ;;  %s376_s19 = scalar_lea.vmem [#allocation11], %s2601_s5 }
  0x8d   : > { %v393_v10 = vsel %vm391_vm1, %v3511_v8, 0  ;;  %2704 = vmatpush3.msra.mxu0 %v3505_v4  ;;  %v500_v11 = vsub.f32 %v390_v1, %v3505_v4  ;;  %v2606_v32 = vld [vmem:[%s4050_s3] ss:$0 sm:$0xff]  ;;  %v3593_v52 = vshrl.u32 %v896_v45, 7  ;;  %vm1128_vm2 = vcmask 1041409   ;;  %s2467_s23 = sshll.u32 %s376_s19, 4  ;;  %s4009_s29 = scalar_lea.hbm %s4054_s7, %s2609_s13  ;;  %s2468_s23 = int_to_ptr.vmem [resolvable:$true] %s2467_s23 }
  0x8e   : > { %v3519_v12 = vand.u32 4294901760, %v393_v10  ;;  %v507_v13 = vsub.f32 %v389_v2, %v3507_v5  ;;  %v514_v14 = vsub.f32 %v388_v3, %v3509_v6  ;;  %2705 = vmatprep.subr.mxu0 %v3244_v0  ;;  %v521_v15 = vsub.f32 %v387_v7, %v3513_v9  ;;  %v3600_v1 = vld [vmem:[%s3477_s15] sm:$0xff]  ;;  %s2454_s11 = scalar_lea.sflag [#allocation4], %s3473_s17  ;;  %s3159_s16 = scalar_lea.vmem %s2468_s23, 128 }
  0x8f   : > { %2706 = vmatpush3.msra.mxu0 %v3507_v5  ;;  %v501_v16 = vand.u32 4294901760, %v500_v11  ;;  %v887_v33 = vmul.f32 %v2606_v32, %v3511_v8  ;;  %v895_v51 = vunpack.c.0.s8 %v894_v44  ;;  %v3597_v60 = vsub.s32 0, %v3593_v52  ;;  %p3160_p9 = scmp.ne.s32.totalorder %s2468_s23, %s3159_s16  ;;  %p4086_p13 = scmp.ne.s32.totalorder %s4073_s20, 0 }
  0x90   : > { %v3527_v17 = vsub.f32 %v393_v10, %v3519_v12  ;;  %v508_v18 = vand.u32 4294901760, %v507_v13  ;;  %v515_v19 = vand.u32 4294901760, %v514_v14  ;;  %2707 = vmatprep.subr.mxu0 %v3244_v0  ;;  %v522_v20 = vand.u32 4294901760, %v521_v15  ;;  %s3248_s18 = smov [#allocation11]  }
  0x91   : > { %2708 = vmatpush3.msra.mxu0 %v3509_v6  ;;  %v502_v21 = vsub.f32 %v500_v11, %v501_v16  ;;  %v888_v34 = vsel %vm391_vm1, %v887_v33, 0.0  ;;  %v898_v54 = vsub.s32 %v895_v51, %v3593_v52  ;;  %v3247_v44 = vmov 0   ;;  %p3161_p0 = pnand %p3160_p9, %p4086_p13  ;;  %s3163_s28 = sshll.u32 %s3248_s18, 4  ;;  %s3164_s28 = int_to_ptr.vmem [resolvable:$false] %s3163_s28 }
  0x92   : > { %v3532_v22 = vand.u32 4294901760, %v3527_v17  ;;  %v509_v23 = vsub.f32 %v507_v13, %v508_v18  ;;  %v516_v24 = vsub.f32 %v514_v14, %v515_v19  ;;  %2709 = vmatprep.subr.mxu0 %v3244_v0  ;;  %v523_v28 = vsub.f32 %v521_v15, %v522_v20  ;;  %889 = vadd.xlane.f32.xlu0 %v888_v34  ;;  %v3633_v34 = vld [vmem:[%s3477_s15 + $0x38] sm:$0xff]  ;;  %p3166_p10 = scmp.lt.s32.totalorder %s2468_s23, %s3164_s28 }
  0x93   : > { %2710 = vmatpush3.msra.mxu0 %v3513_v9  ;;  %v503_v25 = vand.u32 4294901760, %v502_v21  ;;  %2989 = vset.pattern.permute.xlu1 %v3247_v44  ;;  %vm1130_vm3 = vcmask 1042434   ;;  %vm1132_vm4 = vcmask 1043459   ;;  %vm1134_vm5 = vcmask 1044484   ;;  %p3162_p11 = pneg %p3161_p0 }
  0x94   : > { %v467_v26 = vsub.f32 %v3527_v17, %v3532_v22  ;;  %v510_v27 = vand.u32 4294901760, %v509_v23  ;;  %2725 = vmatprep.subr.mxu0 %v3244_v0  ;;  %v517_v30 = vand.u32 4294901760, %v516_v24  ;;  %v524_v31 = vand.u32 4294901760, %v523_v28  ;;  %2990 = vset.pattern.permute.xlu0 %v3247_v44 }
  0x95   : > { %2715 = vmatpush3.msra.mxu1 %v503_v25  ;;  %vm1136_vm6 = vcmask 1045509   ;;  %vm1138_vm7 = vcmask 1046534   ;;  %vm1140_vm8 = vcmask 1047559   ;;  %vm1143_vm9 = vcmask 64512  }
  0x96   : > { %v3539_v29 = vand.u32 4294901760, %v467_v26  ;;  %2716 = vmatprep.subr.mxu1 %v3244_v0 }
  0x97   : > { %2717 = vmatpush3.msra.mxu1 %v510_v27 }
  0x98   : > { %2712 = vmatmul.mubr.f32.vlgmr.msra.gmra.mxu0 %v3539_v29  ;;  %2718 = vmatprep.subr.mxu1 %v3244_v0 }
  0x99   : > { %2726 = vmatpush3.msra.mxu0 %v500_v11  ;;  %2719 = vmatpush3.msra.mxu1 %v517_v30  ;;  %v3627_v30 = vld [vmem:[%s3477_s15 + $0x20] sm:$0xff] }
  0x9a   : > { %2727 = vmatprep.subr.mxu0 %v3244_v0  ;;  %2720 = vmatprep.subr.mxu1 %v3244_v0 }
  0x9b   : > { %2728 = vmatpush3.msra.mxu0 %v507_v13  ;;  %2721 = vmatpush3.msra.mxu1 %v524_v31  ;;  %v3610_v13 = vld [vmem:[%s3477_s15 + $0x18] sm:$0xff] }
  0x9c   : > { %2729 = vmatprep.subr.mxu0 %v3244_v0  ;;  %2723 = vmatmul.mubr.f32.vlgmr.msra.gmra.mxu1 %v3519_v12 }
  0x9d   : > { %2730 = vmatpush3.msra.mxu0 %v514_v14  ;;  %2736 = vmatprep.subr.mxu1 %v3244_v0  ;;  %v3613_v14 = vld [vmem:[%s3477_s15 + $0x10] sm:$0xff] }
  0x9e   : > { %2731 = vmatprep.subr.mxu0 %v3244_v0  ;;  %2733 = vmatprep.mubr.msk.f32.mxu0 %vm3245_vm0, %v3244_v0 }
  0x9f   : > { %2732 = vmatpush3.msra.mxu0 %v521_v15  ;;  %2737 = vmatpush3.msra.mxu1 %v3505_v4 }
  0xa0   : > { %2734 = vmatmul.mubr.f32.vlgmr.msra.gmra.mxu0 %v3527_v17  ;;  %2738 = vmatprep.subr.mxu1 %v3244_v0 }
  0xa1   : > { %2747 = vmatprep.subr.mxu0 %v3244_v0  ;;  %2739 = vmatpush3.msra.mxu1 %v3507_v5 }
  0xa2   : > { %2748 = vmatpush3.msra.mxu0 %v501_v16  ;;  %2740 = vmatprep.subr.mxu1 %v3244_v0 }
  0xa3   : > { %2749 = vmatprep.subr.mxu0 %v3244_v0  ;;  %2741 = vmatpush3.msra.mxu1 %v3509_v6 }
  0xa4   : > { %2750 = vmatpush3.msra.mxu0 %v508_v18  ;;  %2742 = vmatprep.subr.mxu1 %v3244_v0 }
  0xa5   : > { %2751 = vmatprep.subr.mxu0 %v3244_v0  ;;  %2743 = vmatpush3.msra.mxu1 %v3513_v9 }
  0xa6   : > { %2744 = vmatprep.mubr.msk.f32.mxu1 %vm3245_vm0, %v3244_v0  ;;  %2752 = vmatpush3.msra.mxu0 %v515_v19 }
  0xa7   : > { %2745 = vmatmul.mubr.f32.vlgmr.msra.gmra.mxu1 %v3532_v22  ;;  %2753 = vmatprep.subr.mxu0 %v3244_v0 }
  0xa8   : > { %2758 = vmatprep.subr.mxu1 %v3244_v0  ;;  %2754 = vmatpush3.msra.mxu0 %v522_v20  ;;  %v3619_v20 = vld [vmem:[%s3477_s15 + $0x28] sm:$0xff] }
  0xa9   : > { %2755 = vmatprep.mubr.msk.f32.mxu0 %vm3245_vm0, %v3244_v0  ;;  %2759 = vmatpush3.msra.mxu1 %v3505_v4 }
  0xaa   : > { %2756 = vmatmul.mubr.f32.vlgmr.msra.gmra.mxu0 %v3519_v12  ;;  %2760 = vmatprep.subr.mxu1 %v3244_v0 }
  0xab   : > { %2766 = vmatprep.mubr.msk.f32.mxu1 %vm3245_vm0, %v3244_v0  ;;  %2761 = vmatpush3.msra.mxu1 %v3507_v5 }
  0xac   : > { %2769 = vmatprep.subr.mxu0 %v3244_v0  ;;  %2762 = vmatprep.subr.mxu1 %v3244_v0 }
  0xad   : > { %2777 = vmatprep.mubr.msk.f32.mxu0 %vm3245_vm0, %v3244_v0  ;;  %2763 = vmatpush3.msra.mxu1 %v3509_v6  ;;  %v3604_v6 = vld [vmem:[%s3477_s15 + $0x8] sm:$0xff] }
  0xae   : > { %2764 = vmatprep.subr.mxu1 %v3244_v0 }
  0xaf   : > { %2765 = vmatpush3.msra.mxu1 %v3513_v9 }
  0xb0   : > { %2767 = vmatmul.mubr.f32.vlgmr.msra.gmra.mxu1 %v3519_v12  ;;  %2780 = vmatprep.subr.mxu1 %v3244_v0 }
  0xb1   : > { %2788 = vmatprep.mubr.msk.f32.mxu1 %vm3245_vm0, %v3244_v0 }
 0x158   : > { %v470_v35 = vpop.f32.mrf.mxu0 }
 0x15a   : > { %v2713_v36 = vpop.f32.mrf.mxu0 }
 0x15c   : > { %v561_v37 = vpop.f32.mrf.mxu1 }
 0x15d   : > { %v562_v41 = vadd.f32 %v561_v37, %v470_v35 }
 0x15e   : > { %v2724_v38 = vpop.f32.mrf.mxu1 }
 0x15f   : > { %v3639_v38 = vld [vmem:[%s3477_s15 + $0x30] sm:$0xff]  ;;  %s3165_s15 = scalar_lea.vmem %s3164_s28, 256 }
 0x160   : > { %v641_v39 = vpop.f32.mrf.mxu0  ;;  %p3167_p1 = scmp.lt.s32.totalorder %s3165_s15, %s3159_s16 }
 0x161   : > { %v642_v47 = vadd.f32 %v641_v39, %v562_v41 }
 0x162   : > { %v2735_v40 = vpop.f32.mrf.mxu0  ;;  %p3168_p4 = por %p3167_p1, %p3166_p10 }
 0x164   : > { %p3169_p6 = pnand %p3168_p4, %p3162_p11 }
 0x167   : > { %v718_v42 = vpop.f32.mrf.mxu1 }
 0x168   : > { %v719_v49 = vadd.f32 %v718_v42, %v642_v47  ;;  %v890_v47 = vpop.xlane.xlu0 %889 }
 0x169   : > { %v2746_v46 = vpop.f32.mrf.mxu1 }
 0x16a   : > { %v801_v48 = vpop.f32.mrf.mxu0 }
 0x16b   : > { %v802_v53 = vadd.f32 %v801_v48, %v719_v49  ;;  %v1017_v48 = vrot.slane %v890_v47, %v3597_v60  ;;  %v3649_v49 = vsub.s32 1, %v3593_v52 }
 0x16c   : > { %v2757_v50 = vpop.f32.mrf.mxu0 }
 0x170   : > { %v876_v55 = vpop.f32.mrf.mxu1 }
 0x171   : > { %v877_v56 = vadd.f32 %v876_v55, %v802_v53  ;;  %v1021_v53 = vrot.slane %v890_v47, %v3649_v49 }
 0x172   : > { %v2768_v57 = vpop.f32.mrf.mxu1 }
 0x173   : > { %v892_v58 = vcombine.high %v877_v56, %v877_v56  ;;  %v899_v59 = vrot.slane %v877_v56, %v898_v54 }
 0x175   : > { %v906_v61 = vrot.slane %v892_v58, %v898_v54  ;;  %v907_v62 = vcombine.high %v899_v59, %v899_v59  ;;  %v915_v63 = vrot.slane %v899_v59, %v898_v54  ;;  %v3663_v58 = vsub.s32 4, %v3593_v52 }
 0x177   : > { %v908_v2 = vcombine.high %v906_v61, %v906_v61  ;;  %v944_v3 = vrot.slane %v915_v63, %v3597_v60  ;;  %v929_v4 = vrot.slane %v907_v62, %v898_v54  ;;  %v937_v5 = vcombine.high %v915_v63, %v915_v63 }
 0x178   : > { %v922_v7 = vrot.slane %v906_v61, %v898_v54  ;;  %v3668_v62 = vsub.s32 3, %v3593_v52  ;;  %v1033_v63 = vrot.slane %v890_v47, %v3663_v58 }
 0x179   : > { %v981_v8 = vmul.f32 %v944_v3, %v3600_v1  ;;  %v948_v9 = vrot.slane %v929_v4, %v3597_v60  ;;  %v939_v10 = vcombine.high %v929_v4, %v929_v4  ;;  %v952_v11 = vrot.slane %v937_v5, %v3597_v60 }
 0x17a   : > { %v936_v15 = vrot.slane %v908_v2, %v898_v54  ;;  %v960_v23 = vrot.slane %v922_v7, %v3597_v60  ;;  %v938_v28 = vcombine.high %v922_v7, %v922_v7  ;;  %v3655_v54 = vsub.s32 2, %v3593_v52 }
 0x17b   : > { %v989_v16 = vsel %vm391_vm1, %v981_v8, 0.0  ;;  %v982_v18 = vmul.f32 %v948_v9, %v3604_v6  ;;  %v956_v19 = vrot.slane %v939_v10, %v3597_v60  ;;  %v983_v27 = vmul.f32 %v952_v11, %v3613_v14 }
 0x17c   : > { %990 = vadd.xlane.f32.xlu0 %v989_v16  ;;  %v964_v21 = vrot.slane %v936_v15, %v3597_v60  ;;  %v940_v24 = vcombine.high %v936_v15, %v936_v15  ;;  %v985_v36 = vmul.f32 %v960_v23, %v3627_v30  ;;  %v968_v37 = vrot.slane %v938_v28, %v3597_v60 }
 0x17d   : > { %v992_v25 = vsel %vm391_vm1, %v982_v18, 0.0  ;;  %v984_v26 = vmul.f32 %v956_v19, %v3610_v13  ;;  %v995_v35 = vsel %vm391_vm1, %v983_v27, 0.0  ;;  %v1025_v57 = vrot.slane %v890_v47, %v3655_v54 }
 0x17e   : > { %993 = vadd.xlane.f32.xlu1 %v992_v25  ;;  %v986_v32 = vmul.f32 %v964_v21, %v3619_v20  ;;  %v972_v33 = vrot.slane %v940_v24, %v3597_v60  ;;  %v1001_v41 = vsel %vm391_vm1, %v985_v36, 0.0  ;;  %v987_v42 = vmul.f32 %v968_v37, %v3639_v38 }
 0x17f   : > { %v998_v31 = vsel %vm391_vm1, %v984_v26, 0.0  ;;  %v1029_v5 = vrot.slane %v890_v47, %v3668_v62  ;;  %v3676_v7 = vsub.s32 5, %v3593_v52  ;;  %v3683_v11 = vsub.s32 6, %v3593_v52 }
 0x180   : > { %999 = vadd.xlane.f32.xlu0 %v998_v31  ;;  %v1004_v39 = vsel %vm391_vm1, %v986_v32, 0.0  ;;  %v988_v40 = vmul.f32 %v972_v33, %v3633_v34  ;;  %v1007_v46 = vsel %vm391_vm1, %v987_v42, 0.0  ;;  %v3689_v18 = vsub.s32 7, %v3593_v52 }
 0x181   : > { %v1037_v10 = vrot.slane %v890_v47, %v3676_v7  ;;  %v1041_v19 = vrot.slane %v890_v47, %v3683_v11  ;;  %v1095_v31 = vand.u32 127, %v896_v45 }
 0x182   : > { %996 = vadd.xlane.f32.xlu1 %v995_v35  ;;  %v1010_v43 = vsel %vm391_vm1, %v988_v40, 0.0  ;;  %v1045_v24 = vrot.slane %v890_v47, %v3689_v18 }
 0x183   : > { %v3702_v35 = vsub.s32 %v1095_v31, %v3593_v52 }
 0x184   : > { %1005 = vadd.xlane.f32.xlu0 %v1004_v39 }
 0x186   : > { %1002 = vadd.xlane.f32.xlu1 %v1001_v41 }
 0x188   : > { %1011 = vadd.xlane.f32.xlu0 %v1010_v43 }
 0x18a   : > { %1008 = vadd.xlane.f32.xlu1 %v1007_v46 }
 0x205   : > { %v991_v50 = vpop.xlane.xlu0 %990 }
 0x206   : > { %v3651_v51 = vadd.f32 %v1017_v48, %v991_v50 }
 0x207   : > { %v994_v55 = vpop.xlane.xlu1 %993 }
 0x208   : > { %v3657_v56 = vadd.f32 %v1021_v53, %v994_v55  ;;  %1071 = vperm.xlu1 %2989, %v3651_v51  }
 0x209   : > { %v1000_v2 = vpop.xlane.xlu0 %999 }
 0x20a   : > { %1074 = vperm.xlu0 %2990, %v3657_v56   ;;  %v3679_v8 = vadd.f32 %v1029_v5, %v1000_v2 }
 0x20b   : > { %v997_v59 = vpop.xlane.xlu1 %996 }
 0x20c   : > { %v3665_v61 = vadd.f32 %v1025_v57, %v997_v59 }
 0x20d   : > { %v1006_v9 = vpop.xlane.xlu0 %1005 }
 0x20e   : > { %1077 = vperm.xlu1 %2989, %v3665_v61   ;;  %v3686_v15 = vadd.f32 %v1037_v10, %v1006_v9 }
 0x20f   : > { %v1003_v3 = vpop.xlane.xlu1 %1002 }
 0x210   : > { %v3672_v4 = vadd.f32 %v1033_v63, %v1003_v3 }
 0x211   : > { %v1012_v23 = vpop.xlane.xlu0 %1011 }
 0x212   : > { %1083 = vperm.xlu1 %2989, %v3672_v4   ;;  %v3697_v25 = vadd.f32 %v1045_v24, %v1012_v23 }
 0x213   : > { %v1009_v16 = vpop.xlane.xlu1 %1008 }
 0x214   : > { %v3693_v21 = vadd.f32 %v1041_v19, %v1009_v16 }
 0x216   : > { %1080 = vperm.xlu1 %2989, %v3679_v8  }
 0x21a   : > { %1086 = vperm.xlu1 %2989, %v3686_v15  }
 0x21e   : > { %1089 = vperm.xlu1 %2989, %v3693_v21  }
 0x222   : > { %1092 = vperm.xlu1 %2989, %v3697_v25  }
 0x283   : > { %v1072_v26 = vpop.permute.xlu1 %1071 }
 0x284   : > { %v1099_v40 = vrot.slane %v1072_v26, %v3702_v35 }
 0x285   : > { %v1075_v32 = vpop.permute.xlu0 %1074 }
 0x286   : > { %v1103_v36 = vrot.slane %v1075_v32, %v3702_v35 }
 0x288   : > { %v1129_v42 = vsel %vm1128_vm2, %v1103_v36, %v1099_v40 }
 0x289   : > { %v1078_v27 = vpop.permute.xlu1 %1077 }
 0x28a   : > { %v1107_v37 = vrot.slane %v1078_v27, %v3702_v35 }
 0x28c   : > { %v1131_v45 = vsel %vm1130_vm3, %v1107_v37, %v1129_v42 }
 0x28d   : > { %v1084_v28 = vpop.permute.xlu1 %1083 }
 0x28e   : > { %v1115_v46 = vrot.slane %v1084_v28, %v3702_v35 }
 0x291   : > { %v1081_v33 = vpop.permute.xlu1 %1080 }
 0x292   : > { %v1111_v41 = vrot.slane %v1081_v33, %v3702_v35 }
 0x294   : > { %v1133_v52 = vsel %vm1132_vm4, %v1111_v41, %v1131_v45 }
 0x295   : > { %v1087_v39 = vpop.permute.xlu1 %1086  ;;  %v1135_v48 = vsel %vm1134_vm5, %v1115_v46, %v1133_v52 }
 0x296   : > { %v1119_v44 = vrot.slane %v1087_v39, %v3702_v35 }
 0x298   : > { %v1137_v53 = vsel %vm1136_vm6, %v1119_v44, %v1135_v48 }
 0x299   : > { %v1090_v43 = vpop.permute.xlu1 %1089 }
 0x29a   : > { %v1123_v47 = vrot.slane %v1090_v43, %v3702_v35 }
 0x29c   : > { %v1139_v57 = vsel %vm1138_vm7, %v1123_v47, %v1137_v53 }
 0x29d   : > { %v1093_v50 = vpop.permute.xlu1 %1092 }
 0x29e   : > { %v1127_v55 = vrot.slane %v1093_v50, %v3702_v35 }
 0x2a0   : > { %v1141_v59 = vsel %vm1140_vm8, %v1127_v55, %v1139_v57 }
 0x2a1   : > { %v1144_v63 = vsel %vm1143_vm9, %v1141_v59, -inf }
 0x2a2   : > { %1145 = vmax.xlane.f32.xlu1 %v1144_v63 }
 0x32b   : > { %v1146_v2 = vpop.xlane.xlu1 %1145 }
 0x32c   : > { %v1151_v3 = vrot.slane %v1146_v2, %v3597_v60  ;;  %v1155_v5 = vrot.slane %v1146_v2, %v3649_v49  ;;  %v1159_v9 = vrot.slane %v1146_v2, %v3655_v54  ;;  %v1163_v23 = vrot.slane %v1146_v2, %v3668_v62 }
 0x32d   : > { %v1167_v27 = vrot.slane %v1146_v2, %v3663_v58  ;;  %v1171_v32 = vrot.slane %v1146_v2, %v3676_v7 }
 0x32e   : > { %v1188_v10 = vsub.f32 %v3651_v51, %v1151_v3  ;;  %v1189_v16 = vsub.f32 %v3657_v56, %v1155_v5  ;;  %v1190_v24 = vsub.f32 %v3665_v61, %v1159_v9  ;;  %v1191_v28 = vsub.f32 %v3679_v8, %v1163_v23 }
 0x32f   : > { %v1192_v33 = vsub.f32 %v3672_v4, %v1167_v27  ;;  %v1175_v56 = vrot.slane %v1146_v2, %v3683_v11  ;;  %v1193_v36 = vsub.f32 %v3686_v15, %v1171_v32  ;;  %v1179_v8 = vrot.slane %v1146_v2, %v3689_v18 }
 0x330   : > { %v1196_v19 = vmul.f32 1.442695, %v1188_v10  ;;  %v1198_v26 = vmul.f32 1.442695, %v1189_v16  ;;  %v1200_v31 = vmul.f32 1.442695, %v1190_v24 }
 0x331   : > { %v1202_v51 = vmul.f32 1.442695, %v1191_v28  ;;  %v1204_v61 = vmul.f32 1.442695, %v1192_v33  ;;  %v1194_v39 = vsub.f32 %v3693_v21, %v1175_v56  ;;  %v1206_v40 = vmul.f32 1.442695, %v1193_v36 }
 0x332   : > { %2991 = vpow2.f32 %v1196_v19  ;;  %v1195_v4 = vsub.f32 %v3697_v25, %v1179_v8 }
 0x333   : > { %2993 = vpow2.f32 %v1198_v26  ;;  %v1208_v42 = vmul.f32 1.442695, %v1194_v39 }
 0x334   : > { %2995 = vpow2.f32 %v1200_v31  ;;  %v1210_v15 = vmul.f32 1.442695, %v1195_v4 }
 0x335   : > { %2997 = vpow2.f32 %v1202_v51 }
 0x336   : > { %2999 = vpow2.f32 %v1204_v61 }
 0x337   : > { %3001 = vpow2.f32 %v1206_v40 }
 0x338   : > { %3003 = vpow2.f32 %v1208_v42 }
 0x339   : > { %3005 = vpow2.f32 %v1210_v15  ;;  %v1455_v15 = vld [vmem:[#allocation10 + $0x18] sm:$0xff] }
 0x33f   : > { %v3733_v37 = vpop.eup %2991 }
 0x340   : > { %1221 = vperm.xlu0 %2990, %v3733_v37   ;;  %v2994_v41 = vpop.eup %2993 }
 0x341   : > { %v3739_v45 = vpop.eup %2995 }
 0x342   : > { %v3742_v43 = vpop.eup %2997 }
 0x343   : > { %v3745_v21 = vpop.eup %2999 }
 0x344   : > { %1224 = vperm.xlu0 %2990, %v2994_v41   ;;  %v3748_v52 = vpop.eup %3001 }
 0x345   : > { %v3004_v25 = vpop.eup %3003 }
 0x346   : > { %v3751_v44 = vpop.eup %3005 }
 0x348   : > { %1227 = vperm.xlu0 %2990, %v3739_v45  }
 0x34c   : > { %1230 = vperm.xlu0 %2990, %v3742_v43  }
 0x350   : > { %1233 = vperm.xlu0 %2990, %v3745_v21  }
 0x354   : > { %1236 = vperm.xlu0 %2990, %v3748_v52  }
 0x358   : > { %1239 = vperm.xlu0 %2990, %v3004_v25  }
 0x35c   : > { %1242 = vperm.xlu0 %2990, %v3751_v44  }
 0x3bb   : > { %v1222_v46 = vpop.permute.xlu0 %1221 }
 0x3bc   : > { %v1247_v63 = vrot.slane %v1222_v46, %v3702_v35 }
 0x3bf   : > { %v1225_v47 = vpop.permute.xlu0 %1224 }
 0x3c0   : > { %v1251_v57 = vrot.slane %v1225_v47, %v3702_v35  ;;  %v3779_v47 = vand.u32 4294901760, %v1455_v15 }
 0x3c2   : > { %v1276_v9 = vsel %vm1128_vm2, %v1251_v57, %v1247_v63  ;;  %2770 = vmatpush3.msra.mxu0 %v3779_v47 }
 0x3c3   : > { %v1228_v48 = vpop.permute.xlu0 %1227  ;;  %2771 = vmatprep.subr.mxu0 %v3244_v0 }
 0x3c4   : > { %v1255_v59 = vrot.slane %v1228_v48, %v3702_v35 }
 0x3c6   : > { %v1277_v16 = vsel %vm1130_vm3, %v1255_v59, %v1276_v9 }
 0x3c7   : > { %v1231_v50 = vpop.permute.xlu0 %1230 }
 0x3c8   : > { %v1259_v2 = vrot.slane %v1231_v50, %v3702_v35 }
 0x3ca   : > { %v1278_v23 = vsel %vm1132_vm4, %v1259_v2, %v1277_v16 }
 0x3cb   : > { %v1234_v53 = vpop.permute.xlu0 %1233 }
 0x3cc   : > { %v1263_v3 = vrot.slane %v1234_v53, %v3702_v35 }
 0x3ce   : > { %v1279_v24 = vsel %vm1134_vm5, %v1263_v3, %v1278_v23 }
 0x3cf   : > { %v1237_v55 = vpop.permute.xlu0 %1236 }
 0x3d0   : > { %v1267_v10 = vrot.slane %v1237_v55, %v3702_v35  ;;  %v1452_v55 = vld [vmem:[#allocation10] sm:$0xff] }
 0x3d1   : > { %v3805_v63 = vand.u32 4294901760, %v1452_v55 }
 0x3d2   : > { %v1280_v27 = vsel %vm1136_vm6, %v1267_v10, %v1279_v24 }
 0x3d3   : > { %v1240_v5 = vpop.permute.xlu0 %1239  ;;  %v3815_v16 = vsub.f32 %v1452_v55, %v3805_v63 }
 0x3d4   : > { %v1271_v19 = vrot.slane %v1240_v5, %v3702_v35 }
 0x3d5   : > { %v1583_v23 = vand.u32 4294901760, %v3815_v16 }
 0x3d6   : > { %v1281_v31 = vsel %vm1138_vm7, %v1271_v19, %v1280_v27 }
 0x3d7   : > { %v1243_v26 = vpop.permute.xlu0 %1242 }
 0x3d8   : > { %v1275_v28 = vrot.slane %v1243_v26, %v3702_v35 }
 0x3da   : > { %v1282_v32 = vsel %vm1140_vm8, %v1275_v28, %v1281_v31  ;;  %v1584_v28 = vsub.f32 %v3815_v16, %v1583_v23 }
 0x3db   : > { %v1284_v33 = vsel %vm1143_vm9, %v1282_v32, 0.0 }
 0x3dc   : > { %1285 = vadd.xlane.f32.xlu1 %v1284_v33  ;;  %v1450_v33 = vld [vmem:[#allocation8 + $0x10] sm:$0xff] }
 0x465   : > { %v1286_v51 = vpop.xlane.xlu1 %1285 }
 0x466   : > { %v1295_v56 = vrot.slane %v1286_v51, %v3649_v49  ;;  %v1291_v36 = vrot.slane %v1286_v51, %v3597_v60  ;;  %v1315_v61 = vrot.slane %v1286_v51, %v3683_v11  ;;  %v1299_v8 = vrot.slane %v1286_v51, %v3655_v54 }
 0x467   : > { %v1303_v35 = vrot.slane %v1286_v51, %v3668_v62  ;;  %v1307_v39 = vrot.slane %v1286_v51, %v3663_v58  ;;  %v1311_v40 = vrot.slane %v1286_v51, %v3676_v7  ;;  %v1319_v54 = vrot.slane %v1286_v51, %v3689_v18  ;;  %v1454_v62 = vld [vmem:[#allocation10 + $0x10] sm:$0xff]  ;;  %v1453_v18 = vld [vmem:[#allocation10 + $0x8] sm:$0xff] }
 0x468   : > { %3007 = vrcp.f32 %v1295_v56  ;;  %v3783_v7 = vsub.f32 %v1455_v15, %v3779_v47  ;;  %v3794_v53 = vand.u32 4294901760, %v1453_v18  ;;  %v3863_v51 = vand.u32 4294901760, %v1450_v33  ;;  %v1449_v56 = vld [vmem:[#allocation8 + $0x8] sm:$0xff] }
 0x469   : > { %3009 = vrcp.f32 %v1291_v36 }
 0x46a   : > { %3011 = vrcp.f32 %v1315_v61  ;;  %v1562_v50 = vand.u32 4294901760, %v3783_v7  ;;  %v3803_v59 = vsub.f32 %v1453_v18, %v3794_v53  ;;  %v3872_v61 = vsub.f32 %v1450_v33, %v3863_v51 }
 0x46b   : > { %3013 = vrcp.f32 %v1299_v8  ;;  %v1448_v8 = vld [vmem:[#allocation8] sm:$0xff] }
 0x46c   : > { %3015 = vrcp.f32 %v1303_v35  ;;  %v1576_v10 = vand.u32 4294901760, %v3803_v59 }
 0x46d   : > { %3017 = vrcp.f32 %v1307_v39  ;;  %v2071_v39 = vand.u32 4294901760, %v3872_v61 }
 0x46e   : > { %3019 = vrcp.f32 %v1311_v40  ;;  %v1577_v19 = vsub.f32 %v3803_v59, %v1576_v10 }
 0x46f   : > { %3021 = vrcp.f32 %v1319_v54 }
 0x470   : > { %v1578_v27 = vand.u32 4294901760, %v1577_v19 }
 0x475   : > { %v3008_v4 = vpop.eup %3007 }
 0x476   : > { %v3010_v49 = vpop.eup %3009  ;;  %v1331_v42 = vmul.f32 %v3008_v4, %v2994_v41  ;;  %v3785_v41 = vand.u32 4294901760, %v1454_v62  ;;  %v3888_v4 = vand.u32 4294901760, %v1448_v8 }
 0x477   : > { %v3012_v60 = vpop.eup %3011  ;;  %v1329_v11 = vmul.f32 %v3010_v49, %v3733_v37 }
 0x478   : > { %v3014_v46 = vpop.eup %3013  ;;  %1351 = vperm.xlu1 %2989, %v1331_v42   ;;  %v1341_v58 = vmul.f32 %v3012_v60, %v3004_v25  ;;  %2772 = vmatpush3.msra.mxu0 %v3785_v41  ;;  %v3792_v25 = vsub.f32 %v1454_v62, %v3785_v41  ;;  %v2072_v42 = vsub.f32 %v3872_v61, %v2071_v39 }
 0x479   : > { %1346 = vperm.xlu0 %2990, %v1329_v11   ;;  %v1333_v37 = vmul.f32 %v3014_v46, %v3739_v45  ;;  %v3016_v48 = vpop.eup %3015  ;;  %2773 = vmatprep.subr.mxu0 %v3244_v0  ;;  %v1563_v45 = vsub.f32 %v3783_v7, %v1562_v50  ;;  %v3901_v11 = vsub.f32 %v1448_v8, %v3888_v4 }
 0x47a   : > { %v1569_v57 = vand.u32 4294901760, %v3792_v25  ;;  %2774 = vmatpush3.msra.mxu0 %v3794_v53  ;;  %v1335_v2 = vmul.f32 %v3016_v48, %v3742_v43  ;;  %v3018_v3 = vpop.eup %3017  ;;  %v2073_v54 = vand.u32 4294901760, %v2072_v42 }
 0x47b   : > { %2775 = vmatprep.subr.mxu0 %v3244_v0  ;;  %v1564_v5 = vand.u32 4294901760, %v1563_v45  ;;  %v1337_v24 = vmul.f32 %v3018_v3, %v3745_v21  ;;  %v3020_v26 = vpop.eup %3019  ;;  %v2085_v46 = vand.u32 4294901760, %v3901_v11 }
 0x47c   : > { %1376 = vperm.xlu1 %2989, %v1341_v58   ;;  %v1570_v9 = vsub.f32 %v3792_v25, %v1569_v57  ;;  %2776 = vmatpush3.msra.mxu0 %v3805_v63  ;;  %v1339_v21 = vmul.f32 %v3020_v26, %v3748_v52  ;;  %v3022_v31 = vpop.eup %3021  ;;  %v1451_v52 = vld [vmem:[#allocation8 + $0x18] sm:$0xff] }
 0x47d   : > { %1356 = vperm.xlu0 %2990, %v1333_v37   ;;  %2791 = vmatprep.subr.mxu0 %v3244_v0  ;;  %v1343_v32 = vmul.f32 %v3022_v31, %v3751_v44  ;;  %v3853_v44 = vand.u32 4294901760, %v1451_v52  ;;  %v2086_v62 = vsub.f32 %v3901_v11, %v2085_v46 }
 0x47e   : > { %2781 = vmatpush3.msra.mxu1 %v1564_v5  ;;  %v1571_v43 = vand.u32 4294901760, %v1570_v9  ;;  %2778 = vmatmul.mubr.f32.vlgmr.msra.gmra.mxu0 %v3539_v29  ;;  %v1585_v29 = vand.u32 4294901760, %v1584_v28 }
 0x47f   : > { %2782 = vmatprep.subr.mxu1 %v3244_v0  ;;  %2792 = vmatpush3.msra.mxu0 %v3783_v7  ;;  %v2087_v58 = vand.u32 4294901760, %v2086_v62 }
 0x480   : > { %2783 = vmatpush3.msra.mxu1 %v1571_v43  ;;  %2793 = vmatprep.subr.mxu0 %v3244_v0 }
 0x481   : > { %1361 = vperm.xlu0 %2990, %v1335_v2   ;;  %2784 = vmatprep.subr.mxu1 %v3244_v0 }
 0x482   : > { %2785 = vmatpush3.msra.mxu1 %v1578_v27  ;;  %2794 = vmatpush3.msra.mxu0 %v3792_v25 }
 0x483   : > { %2786 = vmatprep.subr.mxu1 %v3244_v0  ;;  %2795 = vmatprep.subr.mxu0 %v3244_v0 }
 0x484   : > { %2787 = vmatpush3.msra.mxu1 %v1585_v29  ;;  %2796 = vmatpush3.msra.mxu0 %v3803_v59 }
 0x485   : > { %1366 = vperm.xlu0 %2990, %v1337_v24   ;;  %2802 = vmatprep.subr.mxu1 %v3244_v0 }
 0x486   : > { %2789 = vmatmul.mubr.f32.vlgmr.msra.gmra.mxu1 %v3519_v12  ;;  %2797 = vmatprep.subr.mxu0 %v3244_v0 }
 0x487   : > { %2803 = vmatpush3.msra.mxu1 %v3779_v47  ;;  %2798 = vmatpush3.msra.mxu0 %v3815_v16 }
 0x488   : > { %2804 = vmatprep.subr.mxu1 %v3244_v0  ;;  %2799 = vmatprep.mubr.msk.f32.mxu0 %vm3245_vm0, %v3244_v0 }
 0x489   : > { %1371 = vperm.xlu0 %2990, %v1339_v21   ;;  %2805 = vmatpush3.msra.mxu1 %v3785_v41 }
 0x48a   : > { %2806 = vmatprep.subr.mxu1 %v3244_v0  ;;  %2813 = vmatprep.subr.mxu0 %v3244_v0 }
 0x48b   : > { %2807 = vmatpush3.msra.mxu1 %v3794_v53  ;;  %2800 = vmatmul.mubr.f32.vlgmr.msra.gmra.mxu0 %v3527_v17  ;;  %v3861_v17 = vsub.f32 %v1451_v52, %v3853_v44 }
 0x48c   : > { %2808 = vmatprep.subr.mxu1 %v3244_v0  ;;  %2810 = vmatprep.mubr.msk.f32.mxu1 %vm3245_vm0, %v3244_v0 }
 0x48d   : > { %1381 = vperm.xlu0 %2990, %v1343_v32   ;;  %2809 = vmatpush3.msra.mxu1 %v3805_v63  ;;  %v2064_v36 = vand.u32 4294901760, %v3861_v17 }
 0x48e   : > { %2814 = vmatpush3.msra.mxu0 %v1562_v50  ;;  %2824 = vmatprep.subr.mxu1 %v3244_v0 }
 0x48f   : > { %2811 = vmatmul.mubr.f32.vlgmr.msra.gmra.mxu1 %v3532_v22  ;;  %2815 = vmatprep.subr.mxu0 %v3244_v0  ;;  %v3874_v22 = vand.u32 4294901760, %v1449_v56  ;;  %v2065_v35 = vsub.f32 %v3861_v17, %v2064_v36 }
 0x490   : > { %2825 = vmatpush3.msra.mxu1 %v3779_v47  ;;  %2816 = vmatpush3.msra.mxu0 %v1569_v57 }
 0x491   : > { %2826 = vmatprep.subr.mxu1 %v3244_v0  ;;  %2817 = vmatprep.subr.mxu0 %v3244_v0  ;;  %v3886_v40 = vsub.f32 %v1449_v56, %v3874_v22  ;;  %v2066_v49 = vand.u32 4294901760, %v2065_v35 }
 0x492   : > { %2827 = vmatpush3.msra.mxu1 %v3785_v41  ;;  %2818 = vmatpush3.msra.mxu0 %v1576_v10 }
 0x493   : > { %2828 = vmatprep.subr.mxu1 %v3244_v0  ;;  %2819 = vmatprep.subr.mxu0 %v3244_v0  ;;  %v2078_v60 = vand.u32 4294901760, %v3886_v40 }
 0x494   : > { %2829 = vmatpush3.msra.mxu1 %v3794_v53  ;;  %2820 = vmatpush3.msra.mxu0 %v1583_v23 }
 0x495   : > { %2821 = vmatprep.mubr.msk.f32.mxu0 %vm3245_vm0, %v3244_v0  ;;  %2830 = vmatprep.subr.mxu1 %v3244_v0  ;;  %v2079_v15 = vsub.f32 %v3886_v40, %v2078_v60 }
 0x496   : > { %2822 = vmatmul.mubr.f32.vlgmr.msra.gmra.mxu0 %v3519_v12  ;;  %2831 = vmatpush3.msra.mxu1 %v3805_v63 }
 0x497   : > { %2832 = vmatprep.mubr.msk.f32.mxu1 %vm3245_vm0, %v3244_v0  ;;  %2846 = vmatprep.subr.mxu1 %v3244_v0  ;;  %v2080_v47 = vand.u32 4294901760, %v2079_v15 }
 0x498   : > { %2833 = vmatmul.mubr.f32.vlgmr.msra.gmra.mxu1 %v3519_v12  ;;  %2835 = vmatprep.subr.mxu0 %v3244_v0 }
 0x499   : > { %2847 = vmatpush3.msra.mxu1 %v2066_v49  ;;  %2854 = vmatprep.mubr.msk.f32.mxu1 %vm3245_vm0, %v3244_v0 }
 0x49a   : > { %2848 = vmatprep.subr.mxu1 %v3244_v0  ;;  %2836 = vmatpush3.msra.mxu0 %v3853_v44 }
 0x49b   : > { %2849 = vmatpush3.msra.mxu1 %v2073_v54  ;;  %2837 = vmatprep.subr.mxu0 %v3244_v0 }
 0x49c   : > { %2850 = vmatprep.subr.mxu1 %v3244_v0  ;;  %2838 = vmatpush3.msra.mxu0 %v3863_v51 }
 0x49d   : > { %2851 = vmatpush3.msra.mxu1 %v2080_v47  ;;  %2839 = vmatprep.subr.mxu0 %v3244_v0 }
 0x49e   : > { %2852 = vmatprep.subr.mxu1 %v3244_v0  ;;  %2840 = vmatpush3.msra.mxu0 %v3874_v22 }
 0x49f   : > { %2853 = vmatpush3.msra.mxu1 %v2087_v58  ;;  %2841 = vmatprep.subr.mxu0 %v3244_v0 }
 0x4a0   : > { %2868 = vmatprep.subr.mxu1 %v3244_v0  ;;  %2842 = vmatpush3.msra.mxu0 %v3888_v4 }
 0x4a1   : > { %2843 = vmatprep.mubr.msk.f32.mxu0 %vm3245_vm0, %v3244_v0  ;;  %2857 = vmatprep.subr.mxu0 %v3244_v0 }
 0x4f3   : > { %v1352_v12 = vpop.permute.xlu1 %1351 }
 0x4f4   : > { %v1385_v7 = vmul.f32 %v1352_v12, %v3604_v6  ;;  %v1347_v41 = vpop.permute.xlu0 %1346 }
 0x4f5   : > { %v1384_v37 = vmul.f32 %v1347_v41, %v3600_v1 }
 0x4f6   : > { %v1399_v18 = vsel %vm391_vm1, %v1385_v7, 0.0 }
 0x4f7   : > { %v1400_v48 = vrot.slane %v1399_v18, 4  ;;  %v1392_v50 = vsel %vm391_vm1, %v1384_v37, 0.0  ;;  %v1377_v25 = vpop.permute.xlu1 %1376 }
 0x4f8   : > { %v1393_v53 = vrot.slane %v1392_v50, 4  ;;  %v1357_v55 = vpop.permute.xlu0 %1356  ;;  %v1390_v57 = vmul.f32 %v1377_v25, %v3639_v38 }
 0x4f9   : > { %v1386_v45 = vmul.f32 %v1357_v55, %v3613_v14  ;;  %v1401_v59 = vadd.f32 %v1400_v48, %v1399_v18 }
 0x4fa   : > { %v1394_v2 = vadd.f32 %v1393_v53, %v1392_v50  ;;  %v1434_v5 = vsel %vm391_vm1, %v1390_v57, 0.0 }
 0x4fb   : > { %v1406_v63 = vsel %vm391_vm1, %v1386_v45, 0.0  ;;  %v1402_v10 = vrot.slane %v1401_v59, 2  ;;  %v1435_v14 = vrot.slane %v1434_v5, 4 }
 0x4fc   : > { %v1407_v6 = vrot.slane %v1406_v63, 4  ;;  %v1362_v3 = vpop.permute.xlu0 %1361  ;;  %v1395_v43 = vrot.slane %v1394_v2, 2 }
 0x4fd   : > { %v1387_v1 = vmul.f32 %v1362_v3, %v3610_v13  ;;  %v1403_v27 = vadd.f32 %v1402_v10, %v1401_v59  ;;  %v1436_v32 = vadd.f32 %v1435_v14, %v1434_v5 }
 0x4fe   : > { %v1408_v9 = vadd.f32 %v1407_v6, %v1406_v63  ;;  %v1396_v29 = vadd.f32 %v1395_v43, %v1394_v2 }
 0x4ff   : > { %v1413_v16 = vsel %vm391_vm1, %v1387_v1, 0.0  ;;  %v1404_v35 = vrot.slane %v1403_v27, 1  ;;  %v1437_v47 = vrot.slane %v1436_v32, 2 }
 0x500   : > { %v1414_v19 = vrot.slane %v1413_v16, 4  ;;  %v1367_v23 = vpop.permute.xlu0 %1366  ;;  %v1409_v24 = vrot.slane %v1408_v9, 2  ;;  %v1397_v42 = vrot.slane %v1396_v29, 1 }
 0x501   : > { %v1388_v38 = vmul.f32 %v1367_v23, %v3627_v30  ;;  %v1405_v37 = vadd.f32 %v1404_v35, %v1403_v27  ;;  %v1438_v53 = vadd.f32 %v1437_v47, %v1436_v32 }
 0x502   : > { %v1415_v26 = vadd.f32 %v1414_v19, %v1413_v16  ;;  %v1410_v52 = vadd.f32 %v1409_v24, %v1408_v9 }
 0x503   : > { %v1420_v28 = vsel %vm391_vm1, %v1388_v38, 0.0  ;;  %v1439_v3 = vrot.slane %v1438_v53, 1 }
 0x504   : > { %v1416_v21 = vrot.slane %v1415_v26, 2  ;;  %v1421_v13 = vrot.slane %v1420_v28, 4  ;;  %v1372_v31 = vpop.permute.xlu0 %1371  ;;  %v1411_v62 = vrot.slane %v1410_v52, 1 }
 0x505   : > { %v1389_v33 = vmul.f32 %v1372_v31, %v3619_v20  ;;  %v1398_v20 = vadd.f32 %v1397_v42, %v1396_v29  ;;  %v1440_v23 = vadd.f32 %v1439_v3, %v1438_v53 }
 0x506   : > { %v1417_v56 = vadd.f32 %v1416_v21, %v1415_v26  ;;  %v1422_v8 = vadd.f32 %v1421_v13, %v1420_v28  ;;  %v1412_v55 = vadd.f32 %v1411_v62, %v1410_v52 }
 0x507   : > { %v1427_v49 = vsel %vm391_vm1, %v1389_v33, 0.0  ;;  %v1949_v2 = vsel %vm1128_vm2, %v1405_v37, %v1398_v20  ;;  %v2607_v20 = vld [vmem:[%s4053_s6] ss:$0 sm:$0xff] }
 0x508   : > { %v1423_v54 = vrot.slane %v1422_v8, 2  ;;  %v1428_v30 = vrot.slane %v1427_v49, 4  ;;  %v1382_v15 = vpop.permute.xlu0 %1381  ;;  %v1418_v12 = vrot.slane %v1417_v56, 1  ;;  %v1950_v1 = vsel %vm1130_vm3, %v1412_v55, %v1949_v2 }
 0x509   : > { %v1391_v58 = vmul.f32 %v1382_v15, %v3633_v34 }
 0x50a   : > { %v1424_v7 = vadd.f32 %v1423_v54, %v1422_v8  ;;  %v1429_v41 = vadd.f32 %v1428_v30, %v1427_v49  ;;  %v1419_v45 = vadd.f32 %v1418_v12, %v1417_v56 }
 0x50b   : > { %v1441_v18 = vsel %vm391_vm1, %v1391_v58, 0.0 }
 0x50c   : > { %v1425_v48 = vrot.slane %v1424_v7, 1  ;;  %v1430_v50 = vrot.slane %v1429_v41, 2  ;;  %v1442_v25 = vrot.slane %v1441_v18, 4  ;;  %v1951_v5 = vsel %vm1132_vm4, %v1419_v45, %v1950_v1 }
 0x50e   : > { %v1431_v57 = vadd.f32 %v1430_v50, %v1429_v41  ;;  %v1443_v59 = vadd.f32 %v1442_v25, %v1441_v18  ;;  %v1426_v63 = vadd.f32 %v1425_v48, %v1424_v7 }
 0x510   : > { %v1432_v6 = vrot.slane %v1431_v57, 1  ;;  %v1444_v34 = vrot.slane %v1443_v59, 2  ;;  %v1952_v16 = vsel %vm1134_vm5, %v1426_v63, %v1951_v5 }
 0x512   : > { %v1433_v9 = vadd.f32 %v1432_v6, %v1431_v57  ;;  %v1445_v10 = vadd.f32 %v1444_v34, %v1443_v59 }
 0x514   : > { %v1953_v43 = vsel %vm1136_vm6, %v1433_v9, %v1952_v16  ;;  %v1446_v19 = vrot.slane %v1445_v10, 1 }
 0x515   : > { %v1954_v24 = vsel %vm1138_vm7, %v1440_v23, %v1953_v43 }
 0x516   : > { %v1447_v14 = vadd.f32 %v1446_v19, %v1445_v10 }
 0x518   : > { %v1955_v38 = vsel %vm1140_vm8, %v1447_v14, %v1954_v24 }
 0x519   : > { %v1956_v26 = vsel %vm391_vm1, %v1955_v38, 0 }
 0x51a   : > { %v2027_v27 = vand.u32 4294901760, %v1956_v26 }
 0x51c   : > { %v2028_v28 = vsub.f32 %v1956_v26, %v2027_v27  ;;  %2855 = vmatmul.mubr.f32.vlgmr.msra.gmra.mxu1 %v2027_v27 }
 0x51d   : > { %2869 = vmatpush3.msra.mxu1 %v3853_v44  ;;  %2876 = vmatprep.mubr.msk.f32.mxu1 %vm3245_vm0, %v3244_v0 }
 0x51e   : > { %2870 = vmatprep.subr.mxu1 %v3244_v0  ;;  %v2029_v29 = vand.u32 4294901760, %v2028_v28 }
 0x51f   : > { %2871 = vmatpush3.msra.mxu1 %v3863_v51 }
 0x520   : > { %2872 = vmatprep.subr.mxu1 %v3244_v0  ;;  %v2030_v21 = vsub.f32 %v2028_v28, %v2029_v29 }
 0x521   : > { %2873 = vmatpush3.msra.mxu1 %v3874_v22 }
 0x522   : > { %2874 = vmatprep.subr.mxu1 %v3244_v0  ;;  %v2031_v13 = vand.u32 4294901760, %v2030_v21 }
 0x523   : > { %2875 = vmatpush3.msra.mxu1 %v3888_v4 }
 0x524   : > { %2877 = vmatmul.mubr.f32.vlgmr.msra.gmra.mxu1 %v2029_v29  ;;  %2890 = vmatprep.subr.mxu1 %v3244_v0 }
 0x525   : > { %2844 = vmatmul.mubr.f32.vlgmr.msra.gmra.mxu0 %v2031_v13  ;;  %2891 = vmatpush3.msra.mxu1 %v3853_v44 }
 0x526   : > { %2858 = vmatpush3.msra.mxu0 %v3861_v17  ;;  %2892 = vmatprep.subr.mxu1 %v3244_v0 }
 0x527   : > { %2859 = vmatprep.subr.mxu0 %v3244_v0  ;;  %2893 = vmatpush3.msra.mxu1 %v3863_v51 }
 0x528   : > { %2860 = vmatpush3.msra.mxu0 %v3872_v61  ;;  %2894 = vmatprep.subr.mxu1 %v3244_v0 }
 0x529   : > { %2861 = vmatprep.subr.mxu0 %v3244_v0  ;;  %2895 = vmatpush3.msra.mxu1 %v3874_v22 }
 0x52a   : > { %2862 = vmatpush3.msra.mxu0 %v3886_v40  ;;  %2896 = vmatprep.subr.mxu1 %v3244_v0 }
 0x52b   : > { %2863 = vmatprep.subr.mxu0 %v3244_v0  ;;  %2865 = vmatprep.mubr.msk.f32.mxu0 %vm3245_vm0, %v3244_v0 }
 0x52c   : > { %2864 = vmatpush3.msra.mxu0 %v3901_v11  ;;  %2897 = vmatpush3.msra.mxu1 %v3888_v4 }
 0x52d   : > { %2898 = vmatprep.mubr.msk.f32.mxu1 %vm3245_vm0, %v3244_v0  ;;  %2866 = vmatmul.mubr.f32.vlgmr.msra.gmra.mxu0 %v2028_v28 }
 0x52e   : > { %2879 = vmatprep.subr.mxu0 %v3244_v0  ;;  %2899 = vmatmul.mubr.f32.vlgmr.msra.gmra.mxu1 %v2027_v27 }
 0x52f   : > { %2880 = vmatpush3.msra.mxu0 %v2064_v36  ;;  %2887 = vmatprep.mubr.msk.f32.mxu0 %vm3245_vm0, %v3244_v0 }
 0x530   : > { %2881 = vmatprep.subr.mxu0 %v3244_v0 }
 0x531   : > { %2882 = vmatpush3.msra.mxu0 %v2071_v39 }
 0x532   : > { %2883 = vmatprep.subr.mxu0 %v3244_v0 }
 0x533   : > { %2884 = vmatpush3.msra.mxu0 %v2078_v60 }
 0x534   : > { %2885 = vmatprep.subr.mxu0 %v3244_v0 }
 0x535   : > { %2886 = vmatpush3.msra.mxu0 %v2085_v46 }
 0x536   : > { %2888 = vmatmul.mubr.f32.vlgmr.msra.gmra.mxu0 %v2027_v27 }
 0x53e   : > { %v1531_v44 = vpop.f32.mrf.mxu0 }
 0x540   : > { %v2779_v17 = vpop.f32.mrf.mxu0 }
 0x546   : > { %v1622_v51 = vpop.f32.mrf.mxu1 }
 0x547   : > { %v1623_v36 = vadd.f32 %v1622_v51, %v1531_v44 }
 0x548   : > { %v2790_v22 = vpop.f32.mrf.mxu1 }
 0x54b   : > { %v1702_v4 = vpop.f32.mrf.mxu0 }
 0x54c   : > { %v1703_v31 = vadd.f32 %v1702_v4, %v1623_v36 }
 0x54d   : > { %v2801_v61 = vpop.f32.mrf.mxu0 }
 0x54f   : > { %v1779_v39 = vpop.f32.mrf.mxu1 }
 0x550   : > { %v1780_v32 = vadd.f32 %v1779_v39, %v1703_v31 }
 0x551   : > { %v2812_v52 = vpop.f32.mrf.mxu1 }
 0x556   : > { %v1862_v33 = vpop.f32.mrf.mxu0 }
 0x557   : > { %v1863_v40 = vadd.f32 %v1862_v33, %v1780_v32 }
 0x558   : > { %v1937_v60 = vpop.f32.mrf.mxu1  ;;  %v2823_v56 = vpop.f32.mrf.mxu0 }
 0x559   : > { %v1938_v0 = vadd.f32 %v1937_v60, %v1863_v40 }
 0x55a   : > { %v2834_v8 = vpop.f32.mrf.mxu1 }
 0x5dc   : > { %v2124_v11 = vpop.f32.mrf.mxu1 }
 0x5de   : > { %v2856_v46 = vpop.f32.mrf.mxu1 }
 0x5e4   : > { %v2281_v35 = vpop.f32.mrf.mxu1 }
 0x5e5   : > { %v2033_v49 = vpop.f32.mrf.mxu0 }
 0x5e6   : > { %v2878_v42 = vpop.f32.mrf.mxu1  ;;  %v2034_v30 = vadd.f32 %v2033_v49, %v1938_v0 }
 0x5e7   : > { %v2845_v54 = vpop.f32.mrf.mxu0 }
 0x5e8   : > { %v2125_v62 = vadd.f32 %v2124_v11, %v2034_v30 }
 0x5ed   : > { %v2204_v15 = vpop.f32.mrf.mxu0 }
 0x5ee   : > { %v2439_v47 = vpop.f32.mrf.mxu1  ;;  %v2205_v7 = vadd.f32 %v2204_v15, %v2125_v62 }
 0x5ef   : > { %v2867_v58 = vpop.f32.mrf.mxu0 }
 0x5f0   : > { %v2900_v12 = vpop.f32.mrf.mxu1  ;;  %v2282_v41 = vadd.f32 %v2281_v35, %v2205_v7 }
 0x5f6   : > { %v2364_v37 = vpop.f32.mrf.mxu0 }
 0x5f7   : > { %v2365_v18 = vadd.f32 %v2364_v37, %v2282_v41 }
 0x5f8   : > { %v2889_v48 = vpop.f32.mrf.mxu0 }
 0x5f9   : > { %v2440_v50 = vadd.f32 %v2439_v47, %v2365_v18 }
 0x5fb   : > { %v2450_v25 = vadd.f32 %v2607_v20, %v2440_v50 }
 0x5fd   : > { %3023 = vtanh.f32 %v2450_v25 }
 0x60a   : > { %v3024_v53 = vpop.eup %3023 }
 0x60b   : > { %2452 = vst.msk [vmem:[%s376_s19] sm:$0xff] %vm391_vm1, %v3024_v53 }
 0x60c   : > { %3172 = shalt.err (!%p3169_p6)
}
 0x60d   : > { %s3173_s2 = scalar_lea.hbm %s4009_s29, 128  ;;  %s3177_s9 = scalar_lea.hbm %s4054_s7, 256 }
 0x60e   : > { %p3174_p3 = scmp.ne.s32.totalorder %s4009_s29, %s3173_s2  ;;  %p3178_p2 = scmp.lt.s32.totalorder %s4009_s29, %s4054_s7 }
 0x60f   : > { %p3179_p7 = scmp.lt.s32.totalorder %s3177_s9, %s3173_s2 }
 0x610   : > { %p3175_p5 = pnand %p3174_p3, %p4086_p13 }
 0x611   : > { %p3180_p12 = por %p3179_p7, %p3178_p2 }
 0x612   : > { %p3176_p8 = pneg %p3175_p5 }
 0x614   : > { %p3181_p9 = pnand %p3180_p12, %p3176_p8 }
 0x616   : > { %3184 = shalt.err (!%p3181_p9)
}
 0x617   : > { %2917 = dma.vmem_to_hbm [thread:$0]  (%p4086_p13), %s2468_s23, 128, %s4009_s29, %s2454_s11  }
 0x618 PF: > { %s2479_s22 = sand.u32 1, %s3223_s24   ;;  %p4087_p0 = scmp.ne.s32.totalorder %s4066_s8, 0 }
 0x619   : > { %p4088_p11 = scmp.ge.s32.totalorder %s3235_s27, 2  ;;  %s2480_s21 = scalar_lea.sflag [#allocation4], %s2479_s22 }
 0x61b   : > { %p2937_p10 = pnand %p4088_p11, %p4087_p0 }
 0x61d   : > { %p2938_p1 = pneg %p2937_p10 }
 0x61f   : > { %3218 = dma.done.wait (%p2938_p1), %s2480_s21, 128  }
 0x620   : > { %3220 = vsyncadd (%p2938_p1), %s2480_s21, 4294967168  ;;  %s4089_s10 = sld [smem:[#allocation17_spill]]  ;;  %p24_p4 = scmp.ge.s32.totalorder %s3378_s14, 4  }
 0x621   : > { %s4090_s24 = smov %s3227_s25  ;;  %s4091_s25 = smov %s3231_s26 }
 0x622   : > { %s4093_s27 = smov %s3378_s14  ;;  %26 = sbr.rel (!%p24_p4) target bundleno = 13 (0xd), region = 118 }
 0x626   : > { %s4092_s26 = smov %s4089_s10 }
 0x627   :  { %2485 = vsyncpa [#allocation3], 1 }
 0x628   :  { %2487 = vsyncpa [#allocation3 + $0x1], 1 }
 0x629   :  { %2488 = vsyncpa [#allocation6], 1 }
 0x62a   :  { %2490 = vsyncpa [#allocation6 + $0x1], 1 }
 0x62b   :  { %2491 = vsyncpa [#allocation9], 1 }
 0x62c   :  { %2492 = vsyncpa [#allocation4], 1 }
 0x62d   :  { %2494 = vsyncpa [#allocation4 + $0x1], 1 }

</bundles_post_ra>
